<compile_context>
chip_gen: v7x
topology: tpu7x:2x2x1
jax: 0.10.0
libtpu: 0.0.40
codegen_flags: <defaults>
</compile_context>

<pallas_src>
import functools
import math

import jax
import jax.numpy as jnp
from jax.experimental import pallas as pl
from jax.experimental.pallas import tpu as pltpu


def _pos_emb_kernel(inv_freq_ref, phase_ref, o_ref):
    # inv_freq_ref / phase_ref : (1, d_model) f32
    # o_ref                    : (tile_s, d_model) f32
    tile_s = o_ref.shape[0]
    i = pl.program_id(0)

    # Row positions for this tile as a (tile_s, 1) column vector.
    pos = (i * tile_s
           + jax.lax.broadcasted_iota(jnp.int32, (tile_s, 1), 0)
           ).astype(jnp.float32)

    # sin(pos * inv_freq)            on even columns (phase = 0)
    # sin(pos * inv_freq + pi/2) = cos on odd columns  (phase = pi/2)
    angle = pos * inv_freq_ref[...] + phase_ref[...]
    o_ref[...] = jnp.sin(angle)


def _choose_tile(max_len: int) -> int:
    """Largest reasonable seq tile: amortizes per-step overhead, keeps VMEM tiny,
    and (when possible) leaves >= 2 grid steps so v7x's two TCs both get work."""
    if max_len <= 8:
        return max_len                      # full-extent block
    cap = 512                               # 512 * d_model * 4 B per buffer — tiny
    half = -(-max_len // 2)                 # cdiv(max_len, 2)
    return min(cap, ((half + 7) // 8) * 8)  # multiple of 8 (sublane rule)


@functools.lru_cache(maxsize=None)
def _encoding_table(d_model: int, max_len: int) -> jax.Array:
    """Build the full [max_len, d_model] sinusoidal table with the Pallas kernel."""
    assert d_model % 2 == 0, "d_model must be even for sin/cos pairing"
    # NOTE: d_model that is a multiple of 128 keeps stores lane-dense (unmasked).

    # Hoisted per-column constants (computed once, in plain JAX).
    col = jnp.arange(d_model, dtype=jnp.int32)
    exponent = (2 * (col // 2)).astype(jnp.float32) / jnp.float32(d_model)
    inv_freq = jnp.exp(-exponent * jnp.float32(math.log(10000.0)))
    inv_freq = inv_freq.reshape(1, d_model)
    phase = ((col % 2).astype(jnp.float32) * jnp.float32(math.pi / 2.0)
             ).reshape(1, d_model)

    tile_s = _choose_tile(max_len)
    grid = (pl.cdiv(max_len, tile_s),)

    return pl.pallas_call(
        _pos_emb_kernel,
        out_shape=jax.ShapeDtypeStruct((max_len, d_model), jnp.float32),
        grid=grid,
        in_specs=[
            pl.BlockSpec((1, d_model), lambda i: (0, 0)),   # inv_freq
            pl.BlockSpec((1, d_model), lambda i: (0, 0)),   # phase
        ],
        out_specs=pl.BlockSpec((tile_s, d_model), lambda i: (i, 0)),
        compiler_params=pltpu.CompilerParams(
            dimension_semantics=("parallel",)),
    )(inv_freq, phase)


def positional_embedding(x: jax.Array, d_model: int, max_len: int) -> jax.Array:
    """Equivalent of PositionalEmbedding(d_model, max_len).forward(x)."""
    seq_len = x.shape[1]
    assert seq_len <= max_len
    # Table is cached per (d_model, max_len); forward is just a slice,
    # exactly like the torch module.
    return _encoding_table(d_model, max_len)[:seq_len, :]


def _reference(seq_len: int, d_model: int) -> jnp.ndarray:
    # Pure-JAX reference mirroring the torch __init__ construction.
    pos = jnp.arange(seq_len, dtype=jnp.float32)[:, None]
    _2i = jnp.arange(0, d_model, 2, dtype=jnp.float32)
    enc = jnp.zeros((seq_len, d_model), jnp.float32)
    enc = enc.at[:, 0::2].set(jnp.sin(pos / 10000.0 ** (_2i / d_model)))
    enc = enc.at[:, 1::2].set(jnp.cos(pos / 10000.0 ** (_2i / d_model)))
    return enc


if __name__ == "__main__":
    d_model = 512      # matches the module's global d_model
    max_len = 64
    batch, seq_len = 2, 8

    key = jax.random.PRNGKey(0)
    # x is only consulted for its seq axis (shape[1]), matching the torch forward.
    x = jax.random.normal(key, (batch, seq_len, d_model), dtype=jnp.float32)

    out = positional_embedding(x, d_model=d_model, max_len=max_len)
    out = jax.block_until_ready(out)

    ref = _reference(seq_len, d_model)
    assert out.shape == (seq_len, d_model)
    assert out.dtype == jnp.float32
    assert jnp.allclose(out, ref, atol=1e-5), "mismatch vs reference"

    # Also verify the whole cached table against the reference at max_len.
    full = jax.block_until_ready(_encoding_table(d_model, max_len))
    assert jnp.allclose(full, _reference(max_len, d_model), atol=1e-5)

    print("KERNEL_OK")
</pallas_src>

<mosaic_0001>
module attributes {stable_mosaic.version = 11 : i64} {
  func.func @_pos_emb_kernel(%arg0: i32, %arg1: memref<1x512xf32, #tpu.memory_space<vmem>>, %arg2: memref<1x512xf32, #tpu.memory_space<vmem>>, %arg3: memref<32x512xf32, #tpu.memory_space<vmem>>) attributes {dimension_semantics = [#tpu.dimension_semantics<parallel>], iteration_bounds = array<i64: 2>, scalar_prefetch = 0 : i64, scratch_operands = 0 : i64, tpu.core_type = #tpu.core_type<tc>, window_params = [{pipeline_mode = #tpu.pipeline_mode<synchronous>, transform_indices = @transform_0, window_bounds = array<i64: 1, 512>}, {pipeline_mode = #tpu.pipeline_mode<synchronous>, transform_indices = @transform_1, window_bounds = array<i64: 1, 512>}, {transform_indices = @transform_2, window_bounds = array<i64: 32, 512>}]} {
    %c32_i32 = arith.constant 32 : i32
    %0 = arith.muli %arg0, %c32_i32 : i32
    %1 = tpu.iota {dimensions = array<i32: 0>} : vector<32x1xi32>
    %2 = vector.broadcast %0 : i32 to vector<32x1xi32>
    %3 = arith.addi %2, %1 : vector<32x1xi32>
    %4 = arith.sitofp %3 : vector<32x1xi32> to vector<32x1xf32>
    %c0 = arith.constant 0 : index
    %c0_0 = arith.constant 0 : index
    %5 = vector.load %arg1[%c0, %c0_0] : memref<1x512xf32, #tpu.memory_space<vmem>>, vector<1x512xf32>
    %6 = vector.broadcast %4 : vector<32x1xf32> to vector<32x512xf32>
    %7 = vector.broadcast %5 : vector<1x512xf32> to vector<32x512xf32>
    %8 = arith.mulf %6, %7 : vector<32x512xf32>
    %c0_1 = arith.constant 0 : index
    %c0_2 = arith.constant 0 : index
    %9 = vector.load %arg2[%c0_1, %c0_2] : memref<1x512xf32, #tpu.memory_space<vmem>>, vector<1x512xf32>
    %10 = vector.broadcast %9 : vector<1x512xf32> to vector<32x512xf32>
    %11 = arith.addf %8, %10 : vector<32x512xf32>
    %12 = math.sin %11 : vector<32x512xf32>
    %c0_3 = arith.constant 0 : index
    %c0_4 = arith.constant 0 : index
    %13 = vector.load %arg3[%c0_3, %c0_4] : memref<32x512xf32, #tpu.memory_space<vmem>>, vector<32x512xf32>
    tpu.vector_store %arg3[%c0_3, %c0_4], %12 {strides = array<i32>} : memref<32x512xf32, #tpu.memory_space<vmem>>, vector<32x512xf32>,
    return
  }
  func.func @transform_0(%arg0: i32) -> (i32, i32) {
    %c0_i32 = arith.constant 0 : i32
    %c0_i32_0 = arith.constant 0 : i32
    %c0_i32_1 = arith.constant 0 : i32
    return %c0_i32, %c0_i32_0 : i32, i32
  }
  func.func @transform_1(%arg0: i32) -> (i32, i32) {
    %c0_i32 = arith.constant 0 : i32
    %c0_i32_0 = arith.constant 0 : i32
    %c0_i32_1 = arith.constant 0 : i32
    return %c0_i32, %c0_i32_0 : i32, i32
  }
  func.func @transform_2(%arg0: i32) -> (i32, i32) {
    %c0_i32 = arith.constant 0 : i32
    %c0_i32_0 = arith.constant 0 : i32
    return %arg0, %c0_i32 : i32, i32
  }
}

</mosaic_0001>

<bundles_post_ra>
// kernel: tpu_custom_call.1
= control target key start
LH: loop header
LB: loop body
LE: loop exit
PB: predicated region body
PF: predicated region fallthrough
CT: control target
= control target key end

     0   :  { %7 = vsyncpa [#allocation3], 0  ;;  %s3872_s0 = inlined_call_operand.hbm [shape: f32[1,512], index: 0, kind: input, shape index: {}]   ;;  %s3873_s1 = inlined_call_operand.hbm [shape: f32[1,512], index: 1, kind: input, shape index: {}]   ;;  %s3874_s2 = inlined_call_operand.hbm [shape: f32[64,512], index: 2, kind: output, shape index: {}]  }
   0x1   :  { %8 = vsyncpa [#allocation6], 0 }
   0x2   :  { %9 = vsyncpa [#allocation4], 0 }
   0x3   :  { %11 = vsyncpa [#allocation4 + $0x1], 0  ;;  %s2438_s9 = smov 0   ;;  %s2440_s10 = smov 0  }
   0x4   :  { %s2442_s11 = smov 0   ;;  %s2444_s12 = smov 0  }
   0x5 LB: > { %s2459_s13 = sadd.s32 4294967295, %s2410_s12   ;;  %s2007_s14 = sadd.s32 4294967294, %s2410_s12   ;;  %s2410_s12 = sphi %s2444_s12, %s3920_s12   ;;  %s2406_s11 = sphi %s2442_s11, %s3919_s11   ;;  %s2402_s10 = sphi %s2440_s10, %s3918_s10   ;;  %s2398_s9 = sphi %s2438_s9, %s3917_s9  }
   0x6   : > { %s2463_s15 = sadd.s32 1, %s2410_s12   ;;  %s66_s16 = sadd.s32 1, %s2406_s11 }
   0x7   : > { %s63_s17 = ssub.s32 %s2410_s12, %s2463_s15  ;;  %p76_p0 = scmp.ne.s32.totalorder %s2406_s11, %s2402_s10 }
   0x8   : > { %p64_p1 = scmp.eq.s32.totalorder %s63_s17, 0  ;;  %p77_p2 = scmp.eq.s32.totalorder %s2459_s13, 1 }
   0x9   : > { %p82_p3 = scmp.ne.s32.totalorder %s2402_s10, %s2398_s9  ;;  %p83_p4 = scmp.eq.s32.totalorder %s2007_s14, 1 }
   0xa   : > { %s2474_s18 = scalar_select %p64_p1, %s2406_s11, %s66_s16  }
   0xb   : > { %p2476_p5 = por %p77_p2, %p76_p0  ;;  %p2480_p6 = por %p83_p4, %p82_p3 }
   0xc   : > { %p2008_p7 = scmp.ge.s32.totalorder %s2410_s12, 1  ;;  %p90_p8 = scmp.lt.s32.totalorder %s2410_s12, 3 }
   0xd   : > { %s3878_s19 = scalar_select %p2476_p5, 1, 0 }
   0xe   : > { %s3879_s20 = scalar_select %p2480_p6, 1, 0 }
   0xf   : > { %p3875_p9 = scmp.eq.s32.totalorder %s2459_s13, 0  ;;  %p2487_p10 = pnand %p2008_p7, %p90_p8 }
  0x10   : > { %s2412_s22 = smov [#allocation2]   ;;  %s2413_s24 = smov [#allocation5]  }
  0x11   : > { %s3880_s21 = scalar_select %p2487_p10, 1, 0 }
  0x12   : > { %s103_s23 = sshll.u32 %s2412_s22, 4  ;;  %p2162_p11 = pneg %p2487_p10  ;;  %s104_s23 = int_to_ptr.vmem [resolvable:$true] %s103_s23 }
  0x13   : > { %s114_s25 = sshll.u32 %s2413_s24, 4  ;;  %s2284_s29 = scalar_lea.hbm %s3872_s0, 64  ;;  %s2499_s25 = int_to_ptr.vmem [resolvable:$true] %s114_s25 }
  0x14   : > { %p2495_p12 = pnand %p3875_p9, %p2162_p11  ;;  %p2285_p13 = scmp.ne.s32.totalorder %s3872_s0, %s2284_s29 }
  0x15   : > { %p2291_p3 = scmp.lt.u32.totalorder %s2284_s29, %s3872_s0 }
  0x16   : > { %p2286_p0 = pneg %p2495_p12 }
  0x18   : > { %p2287_p1 = pnand %p2286_p0, %p2285_p13 }
  0x1a   : > { %p2288_p2 = pneg %p2287_p1 }
  0x1c   : > { %p2293_p4 = pnand %p2291_p3, %p2288_p2 }
  0x1e   : > { %2296 = shalt.err (!%p2293_p4)
}
  0x1f   : > { %s2297_s6 = scalar_lea.vmem %s104_s23, 64  ;;  %p2305_p9 = scmp.lt.s32.totalorder %s104_s23, %s104_s23 }
  0x20   : > { %p2298_p7 = scmp.ne.s32.totalorder %s104_s23, %s2297_s6  ;;  %p2306_p6 = scmp.lt.s32.totalorder %s2297_s6, %s2297_s6 }
  0x22   : > { %p2300_p8 = pnand %p2298_p7, %p2286_p0  ;;  %p2307_p5 = por %p2306_p6, %p2305_p9 }
  0x24   : > { %p2301_p11 = pneg %p2300_p8 }
  0x26   : > { %p2308_p10 = pnand %p2307_p5, %p2301_p11 }
  0x28   : > { %2311 = shalt.err (!%p2308_p10)
}
  0x29   : > { %2165 = dma.hbm_to_vmem [thread:$0]  (!%p2495_p12), %s3872_s0, 64, %s104_s23, [#allocation3]  }
  0x2a   : > { %s2312_s17 = scalar_lea.hbm %s3873_s1, 64 }
  0x2b   : > { %p2313_p13 = scmp.ne.s32.totalorder %s3873_s1, %s2312_s17  ;;  %p2319_p9 = scmp.lt.u32.totalorder %s2312_s17, %s3873_s1 }
  0x2d   : > { %p2315_p6 = pnand %p2313_p13, %p2286_p0 }
  0x2f   : > { %p2316_p5 = pneg %p2315_p6 }
  0x31   : > { %p2321_p10 = pnand %p2319_p9, %p2316_p5 }
  0x33   : > { %2324 = shalt.err (!%p2321_p10)
}
  0x34   : > { %s2325_s23 = scalar_lea.vmem %s2499_s25, 64  ;;  %p2333_p4 = scmp.lt.s32.totalorder %s2499_s25, %s2499_s25 }
  0x35   : > { %p2326_p1 = scmp.ne.s32.totalorder %s2499_s25, %s2325_s23  ;;  %p2334_p7 = scmp.lt.s32.totalorder %s2325_s23, %s2325_s23 }
  0x37   : > { %p2328_p2 = pnand %p2326_p1, %p2286_p0  ;;  %p2335_p8 = por %p2334_p7, %p2333_p4 }
  0x39   : > { %p2329_p3 = pneg %p2328_p2 }
  0x3b   : > { %p2336_p11 = pnand %p2335_p8, %p2329_p3 }
  0x3d   : > { %2339 = shalt.err (!%p2336_p11)
}
  0x3e   : > { %2168 = dma.hbm_to_vmem [thread:$0]  (!%p2495_p12), %s3873_s1, 64, %s2499_s25, [#allocation6]  }
  0x3f   : > { %p3882_p13 = scmp.ne.s32.totalorder %s3880_s21, 0 }
  0x40   : > { %p3883_p6 = scmp.eq.s32.totalorder (!%p3882_p13), %s2459_s13, 0 }
  0x41   : > { %127 = sbr.rel (%p3882_p13) target bundleno = 537 (0x219), region = 28 }
  0x48   : > { %2385 = dma.done.wait (%p3883_p6), [#allocation3], 64   ;;  %p3884_p0 = pmov %p3883_p6 }
  0x4a   : > { %2387 = vsyncadd (%p3884_p0), [#allocation3], 4294967232  ;;  %p3885_p5 = pmov %p3884_p0 }
  0x4b   : > { %p3886_p9 = pmov %p3884_p0 }
  0x4c   : > { %2389 = dma.done.wait (%p3885_p5), [#allocation6], 64  }
  0x4d   : > { %2391 = vsyncadd (%p3886_p9), [#allocation6], 4294967232  ;;  %s2015_s26 = sshll.u32 %s2459_s13, 5  ;;  %v150_v0 = vlaneseq  ;;  %v164_v15 = vld [vmem:[#allocation2] sm:$0xf]  ;;  %s145_s21 = sand.u32 1, %s2402_s10  }
  0x4e   : > { %v155_v1 = vstv %s2015_s26  ;;  %v202_v16 = vld [vmem:[#allocation5] sm:$0xf]  ;;  %s2849_s25 = sshll.u32 %s145_s21, 7  ;;  %s2087_s4 = sshll.u32 %s2459_s13, 11 }
  0x4f   : > { %v151_v2 = vshrl.u32 %v150_v0, 7  ;;  %s2885_s3 = scalar_lea.vmem [#allocation7], %s2849_s25  ;;  %s3824_s8 = scalar_lea.hbm %s3874_s2, %s2087_s4 }
  0x50   : > { %s1935_s5 = sshll.u32 %s2885_s3, 4  ;;  %s3831_s13 = scalar_lea.sflag [#allocation4], %s145_s21  ;;  %s3826_s5 = int_to_ptr.vmem [resolvable:$true] %s1935_s5 }
  0x51   : > { %v152_v3 = vadd.s32 8, %v151_v2  ;;  %v153_v4 = vadd.s32 16, %v151_v2  ;;  %v154_v5 = vadd.s32 24, %v151_v2  ;;  %v156_v6 = vadd.s32 %v155_v1, %v151_v2  ;;  %s2340_s14 = scalar_lea.vmem %s3826_s5, 2048  ;;  %p3915_p10 = scmp.ne.s32.totalorder %s3878_s19, 0 }
  0x52   : > { %v168_v7 = vsub.s32 0, %v151_v2  ;;  %v172_v8 = vsub.s32 1, %v151_v2  ;;  %v176_v9 = vsub.s32 2, %v151_v2  ;;  %v180_v10 = vsub.s32 3, %v151_v2  ;;  %p2341_p12 = scmp.ne.s32.totalorder %s3826_s5, %s2340_s14  ;;  %s2420_s16 = smov [#allocation7]  }
  0x53   : > { %v157_v11 = vadd.s32 %v155_v1, %v152_v3  ;;  %v158_v12 = vadd.s32 %v155_v1, %v153_v4  ;;  %v159_v13 = vadd.s32 %v155_v1, %v154_v5  ;;  %v160_v14 = vcvt.s32.f32 %v156_v6  ;;  %s2344_s17 = sshll.u32 %s2420_s16, 4  ;;  %s2345_s17 = int_to_ptr.vmem [resolvable:$false] %s2344_s17 }
  0x54   : > { %v169_v20 = vrot.slane %v164_v15, %v168_v7  ;;  %v173_v21 = vrot.slane %v164_v15, %v172_v8  ;;  %v177_v22 = vrot.slane %v164_v15, %v176_v9  ;;  %v181_v23 = vrot.slane %v164_v15, %v180_v10  ;;  %p2342_p1 = pnand %p2341_p12, %p3915_p10  ;;  %s2346_s22 = scalar_lea.vmem %s2345_s17, 4096 }
  0x55   : > { %v161_v17 = vcvt.s32.f32 %v157_v11  ;;  %v162_v18 = vcvt.s32.f32 %v158_v12  ;;  %v163_v19 = vcvt.s32.f32 %v159_v13  ;;  %v207_v27 = vrot.slane %v202_v16, %v168_v7  ;;  %p2347_p3 = scmp.lt.s32.totalorder %s3826_s5, %s2345_s17  ;;  %p2348_p4 = scmp.lt.s32.totalorder %s2346_s22, %s2340_s14 }
  0x56   : > { %v186_v28 = vmul.f32 %v169_v20, %v160_v14  ;;  %v187_v29 = vmul.f32 %v173_v21, %v160_v14  ;;  %v188_v30 = vmul.f32 %v177_v22, %v160_v14  ;;  %v211_v40 = vrot.slane %v202_v16, %v172_v8  ;;  %p2343_p2 = pneg %p2342_p1 }
  0x57   : > { %v190_v24 = vmul.f32 %v169_v20, %v161_v17  ;;  %v194_v25 = vmul.f32 %v169_v20, %v162_v18  ;;  %v198_v26 = vmul.f32 %v169_v20, %v163_v19  ;;  %v191_v31 = vmul.f32 %v173_v21, %v161_v17  ;;  %p2349_p7 = por %p2348_p4, %p2347_p3 }
  0x58   : > { %v192_v32 = vmul.f32 %v177_v22, %v161_v17  ;;  %v193_v33 = vmul.f32 %v181_v23, %v161_v17  ;;  %v195_v34 = vmul.f32 %v173_v21, %v162_v18  ;;  %v196_v35 = vmul.f32 %v177_v22, %v162_v18 }
  0x59   : > { %v197_v36 = vmul.f32 %v181_v23, %v162_v18  ;;  %v199_v37 = vmul.f32 %v173_v21, %v163_v19  ;;  %v200_v38 = vmul.f32 %v177_v22, %v163_v19  ;;  %v201_v39 = vmul.f32 %v181_v23, %v163_v19  ;;  %p2350_p8 = pnand %p2349_p7, %p2343_p2 }
  0x5a   : > { %v215_v41 = vrot.slane %v202_v16, %v176_v9  ;;  %v219_v42 = vrot.slane %v202_v16, %v180_v10  ;;  %v2559_v43 = vadd.f32 %v207_v27, %v186_v28  ;;  %v2561_v44 = vadd.f32 %v207_v27, %v190_v24 }
  0x5b   : > { %v2563_v45 = vadd.f32 %v207_v27, %v194_v25  ;;  %v2565_v46 = vadd.f32 %v207_v27, %v198_v26  ;;  %v2567_v47 = vadd.f32 %v211_v40, %v187_v29  ;;  %v2571_v49 = vadd.f32 %v211_v40, %v191_v31 }
  0x5c   : > { %v2569_v48 = vadd.f32 %v215_v41, %v188_v30  ;;  %v2573_v50 = vadd.f32 %v215_v41, %v192_v32  ;;  %v2575_v51 = vadd.f32 %v219_v42, %v193_v33  ;;  %v2577_v52 = vadd.f32 %v211_v40, %v195_v34 }
  0x5d   : > { %v2579_v53 = vadd.f32 %v215_v41, %v196_v35  ;;  %v2581_v54 = vadd.f32 %v219_v42, %v197_v36  ;;  %v2583_v55 = vadd.f32 %v211_v40, %v199_v37  ;;  %v2585_v56 = vadd.f32 %v215_v41, %v200_v38 }
  0x5e   : > { %v2587_v57 = vadd.f32 %v219_v42, %v201_v39  ;;  %v240_v58 = vand.u32 2147483647, %v2559_v43  ;;  %v243_v59 = vand.u32 2139095040, %v2559_v43  ;;  %v344_v60 = vand.u32 2147483647, %v2567_v47 }
  0x5f   : > { %v347_v61 = vand.u32 2139095040, %v2567_v47  ;;  %v451_v2 = vand.u32 2139095040, %v2569_v48  ;;  %v189_v4 = vmul.f32 %v181_v23, %v160_v14  ;;  %v448_v11 = vand.u32 2147483647, %v2569_v48 }
  0x60   : > { %v244_v62 = vshrl.u32 %v243_v59, 23  ;;  %v247_v63 = vand.u32 8388607, %v240_v58  ;;  %v351_v1 = vand.u32 8388607, %v344_v60  ;;  %vm242_vm12 = vcmp.lt.s32.totalorder %v2559_v43, 0 }
  0x61   : > { %v348_v0 = vshrl.u32 %v347_v61, 23  ;;  %v452_v6 = vshrl.u32 %v451_v2, 23  ;;  %v2599_v13 = vadd.f32 %v219_v42, %v189_v4  ;;  %v2607_v21 = vand.u32 8388607, %v448_v11 }
  0x62   : > { %v2016_v3 = vadd.s32 4294967169, %v244_v62  ;;  %v248_v7 = vor.u32 8388608, %v247_v63  ;;  %v352_v9 = vor.u32 8388608, %v351_v1  ;;  %v2414_v24 = vmov 683565275  }
  0x63   : > { %v2020_v5 = vadd.s32 4294967169, %v348_v0  ;;  %v2024_v12 = vadd.s32 4294967169, %v452_v6  ;;  %v2415_v26 = vmov 2475754826   ;;  %v2416_v28 = vmov 2131351028  }
  0x64   : > { %v250_v8 = vadd.s32 1, %v2016_v3  ;;  %v2601_v18 = vshll.u32 %v248_v7, 8  ;;  %v2603_v20 = vshll.u32 %v352_v9, 8  ;;  %v2417_v30 = vmov 2102212464  }
  0x65   : > { %v354_v10 = vadd.s32 1, %v2020_v5  ;;  %v2609_v22 = vadd.s32 1, %v2024_v12  ;;  %v2418_v32 = vmov 920167782   ;;  %v2419_v40 = vmov 1326507024  }
  0x66   : > { %vm251_vm0 = vcmp.gt.s32.totalorder %v250_v8, 0  ;;  %vm2694_vm14 = vcmp.le.f32.partialorder %v240_v58, 0.7853982 }
  0x67   : > { %v252_v15 = vsel %vm251_vm0, %v250_v8, 0  ;;  %vm355_vm1 = vcmp.gt.s32.totalorder %v354_v10, 0  ;;  %vm459_vm6 = vcmp.gt.s32.totalorder %v2609_v22, 0 }
  0x68   : > { %v253_v16 = vshrl.u32 %v252_v15, 5  ;;  %v254_v17 = vand.u32 31, %v252_v15  ;;  %v356_v19 = vsel %vm355_vm1, %v354_v10, 0 }
  0x69   : > { %v358_v14 = vand.u32 31, %v356_v19  ;;  %v2616_v34 = vshrl.u32 %v356_v19, 5 }
  0x6a   : > { %v255_v23 = vsub.s32 32, %v254_v17  ;;  %v257_v25 = vshll.u32 %v2414_v24, %v254_v17  ;;  %v260_v27 = vshll.u32 %v2415_v26, %v254_v17  ;;  %v263_v29 = vshll.u32 %v2416_v28, %v254_v17 }
  0x6b   : > { %v266_v31 = vshll.u32 %v2417_v30, %v254_v17  ;;  %v269_v33 = vshll.u32 %v2418_v32, %v254_v17  ;;  %vm272_vm2 = vcmp.lt.s32.totalorder %v253_v16, 1  ;;  %vm273_vm3 = vcmp.lt.s32.totalorder %v253_v16, 2 }
  0x6c   : > { %v256_v35 = vshrl.u32 %v2414_v24, %v255_v23  ;;  %v258_v36 = vshrl.u32 %v2415_v26, %v255_v23  ;;  %v261_v37 = vshrl.u32 %v2416_v28, %v255_v23  ;;  %v264_v38 = vshrl.u32 %v2417_v30, %v255_v23 }
  0x6d   : > { %v267_v39 = vshrl.u32 %v2418_v32, %v255_v23  ;;  %v270_v41 = vshrl.u32 %v2419_v40, %v255_v23  ;;  %vm275_vm4 = vcmp.lt.s32.totalorder %v253_v16, 4  ;;  %v359_v62 = vsub.s32 32, %v358_v14 }
  0x6e   : > { %v259_v42 = vor.u32 %v258_v36, %v257_v25  ;;  %v262_v59 = vor.u32 %v261_v37, %v260_v27  ;;  %v265_v61 = vor.u32 %v264_v38, %v263_v29  ;;  %vm274_vm5 = vcmp.lt.s32.totalorder %v253_v16, 3 }
  0x6f   : > { %v268_v63 = vor.u32 %v267_v39, %v266_v31  ;;  %v271_v0 = vor.u32 %v270_v41, %v269_v33  ;;  %v361_v1 = vshll.u32 %v2414_v24, %v358_v14  ;;  %v364_v9 = vshll.u32 %v2415_v26, %v358_v14 }
  0x70   : > { %v276_v2 = vsel %vm272_vm2, %v256_v35, %v259_v42  ;;  %v277_v3 = vsel %vm275_vm4, %v265_v61, 2102212464  ;;  %v280_v4 = vsel %vm272_vm2, %v259_v42, %v262_v59  ;;  %v284_v5 = vsel %vm272_vm2, %v262_v59, %v265_v61 }
  0x71   : > { %v278_v6 = vsel %vm274_vm5, %v262_v59, %v277_v3  ;;  %v281_v7 = vsel %vm275_vm4, %v268_v63, 920167782  ;;  %v285_v8 = vsel %vm275_vm4, %v271_v0, 1326507024  ;;  %v360_v15 = vshrl.u32 %v2414_v24, %v359_v62 }
  0x72   : > { %v282_v10 = vsel %vm274_vm5, %v265_v61, %v281_v7  ;;  %v286_v12 = vsel %vm274_vm5, %v268_v63, %v285_v8  ;;  %v362_v17 = vshrl.u32 %v2415_v26, %v359_v62  ;;  %v279_v19 = vsel %vm273_vm3, %v276_v2, %v278_v6 }
  0x73   : > { %v283_v23 = vsel %vm273_vm3, %v280_v4, %v282_v10  ;;  %v287_v25 = vsel %vm273_vm3, %v284_v5, %v286_v12  ;;  %v365_v27 = vshrl.u32 %v2416_v28, %v359_v62  ;;  %v367_v38 = vshll.u32 %v2416_v28, %v358_v14 }
  0x74   : > { %v2637_v29 = vmul.u32.u64.low %v2601_v18, %v287_v25  ;;  %v2638_v31 = vmul.u32.u64.high %v2601_v18, %v287_v25, %v2637_v29  ;;  %v2641_v33 = vmul.u32.u64.low %v2601_v18, %v283_v23  ;;  %v2642_v35 = vmul.u32.u64.high %v2601_v18, %v283_v23, %v2641_v33 }
  0x75   : > { %v363_v36 = vor.u32 %v362_v17, %v361_v1  ;;  %v366_v37 = vor.u32 %v365_v27, %v364_v9  ;;  %v368_v39 = vshrl.u32 %v2417_v30, %v359_v62  ;;  %v370_v16 = vshll.u32 %v2417_v30, %v358_v14 }
  0x76   : > { %v371_v41 = vshrl.u32 %v2418_v32, %v359_v62  ;;  %v373_v42 = vshll.u32 %v2418_v32, %v358_v14  ;;  %v374_v59 = vshrl.u32 %v2419_v40, %v359_v62  ;;  %v295_v61 = vmul.u32 %v2601_v18, %v279_v19 }
  0x77   : > { %v369_v63 = vor.u32 %v368_v39, %v367_v38  ;;  %vm376_vm7 = vcmp.lt.s32.totalorder %v2616_v34, 1  ;;  %vm377_vm8 = vcmp.lt.s32.totalorder %v2616_v34, 2  ;;  %vm297_vm9 = vc.u32 %v2638_v31, %v2641_v33 }
  0x78   : > { %v298_v0 = vadd.s32 1, %v2642_v35  ;;  %v372_v1 = vor.u32 %v371_v41, %v370_v16  ;;  %vm378_vm10 = vcmp.lt.s32.totalorder %v2616_v34, 3  ;;  %v375_v2 = vor.u32 %v374_v59, %v373_v42 }
  0x79   : > { %vm379_vm11 = vcmp.lt.s32.totalorder %v2616_v34, 4  ;;  %v380_v14 = vsel %vm376_vm7, %v360_v15, %v363_v36  ;;  %v384_v62 = vsel %vm376_vm7, %v363_v36, %v366_v37  ;;  %v388_v5 = vsel %vm376_vm7, %v366_v37, %v369_v63 }
  0x7a   : > { %v299_v18 = vsel %vm297_vm9, %v298_v0, %v2642_v35  ;;  %v381_v3 = vsel %vm379_vm11, %v369_v63, 2102212464  ;;  %v385_v4 = vsel %vm379_vm11, %v372_v1, 920167782  ;;  %v389_v9 = vsel %vm379_vm11, %v375_v2, 1326507024 }
  0x7b   : > { %v300_v6 = vadd.s32 %v299_v18, %v295_v61  ;;  %v382_v7 = vsel %vm378_vm10, %v366_v37, %v381_v3  ;;  %v386_v8 = vsel %vm378_vm10, %v369_v63, %v385_v4  ;;  %v390_v17 = vsel %vm378_vm10, %v372_v1, %v389_v9 }
  0x7c   : > { %v383_v10 = vsel %vm377_vm8, %v380_v14, %v382_v7  ;;  %v387_v12 = vsel %vm377_vm8, %v384_v62, %v386_v8  ;;  %v460_v15 = vsel %vm459_vm6, %v2609_v22, 0  ;;  %v391_v23 = vsel %vm377_vm8, %v388_v5, %v390_v17 }
  0x7d   : > { %v301_v19 = vadd.s32 536870912, %v300_v6  ;;  %v2670_v25 = vmul.u32.u64.low %v2603_v20, %v387_v12  ;;  %v2671_v27 = vmul.u32.u64.high %v2603_v20, %v387_v12, %v2670_v25  ;;  %v456_v36 = vor.u32 8388608, %v2607_v21 }
  0x7e   : > { %v2675_v29 = vmul.u32.u64.low %v2603_v20, %v391_v23  ;;  %v2676_v35 = vmul.u32.u64.high %v2603_v20, %v391_v23, %v2675_v29  ;;  %v552_v37 = vand.u32 2147483647, %v2599_v13  ;;  %v462_v39 = vand.u32 31, %v460_v15 }
  0x7f   : > { %v302_v38 = vshrl.u32 %v301_v19, 30  ;;  %v399_v22 = vmul.u32 %v2603_v20, %v383_v10  ;;  %v402_v16 = vadd.s32 1, %v2671_v27  ;;  %v2685_v42 = vshll.u32 %v456_v36, 8 }
  0x80   : > { %v463_v41 = vsub.s32 32, %v462_v39  ;;  %vm401_vm13 = vc.u32 %v2676_v35, %v2670_v25  ;;  %v555_v59 = vand.u32 2139095040, %v2599_v13  ;;  %v2690_v21 = vand.u32 8388607, %v552_v37 }
  0x81   : > { %v303_v34 = vshll.u32 %v302_v38, 30  ;;  %v326_v63 = vsub.s32 4, %v302_v38  ;;  %v403_v0 = vsel %vm401_vm13, %v402_v16, %v2671_v27  ;;  %v461_v1 = vshrl.u32 %v460_v15, 5 }
  0x82   : > { %v404_v2 = vadd.s32 %v403_v0, %v399_v22  ;;  %v465_v14 = vshll.u32 %v2414_v24, %v462_v39  ;;  %v466_v62 = vshrl.u32 %v2415_v26, %v463_v41  ;;  %v468_v18 = vshll.u32 %v2415_v26, %v462_v39 }
  0x83   : > { %v2698_v61 = vsub.s32 %v300_v6, %v303_v34  ;;  %v469_v58 = vshrl.u32 %v2416_v28, %v463_v41  ;;  %v471_v4 = vshll.u32 %v2416_v28, %v462_v39  ;;  %v472_v5 = vshrl.u32 %v2417_v30, %v463_v41 }
  0x84   : > { %v296_v6 = vadd.s32 %v2641_v33, %v2638_v31  ;;  %v405_v7 = vadd.s32 536870912, %v404_v2  ;;  %v474_v8 = vshll.u32 %v2417_v30, %v462_v39  ;;  %v556_v9 = vshrl.u32 %v555_v59, 23 }
  0x85   : > { %v306_v3 = vsub.s32 0, %v2698_v61  ;;  %v327_v12 = vsel %vm242_vm12, %v326_v63, %v302_v38  ;;  %v475_v17 = vshrl.u32 %v2418_v32, %v463_v41  ;;  %vm483_vm15 = vcmp.lt.s32.totalorder %v461_v1, 4 }
  0x86   : > { %v2715_v15 = vshrl.u32 %v405_v7, 30  ;;  %v464_v19 = vshrl.u32 %v2414_v24, %v463_v41  ;;  %v477_v23 = vshll.u32 %v2418_v32, %v462_v39  ;;  %v478_v31 = vshrl.u32 %v2419_v40, %v463_v41 }
  0x87   : > { %v2017_v10 = vmin.u32 %v306_v3, %v2698_v61  ;;  %v467_v27 = vor.u32 %v466_v62, %v465_v14  ;;  %v470_v29 = vor.u32 %v469_v58, %v468_v18  ;;  %v473_v36 = vor.u32 %v472_v5, %v471_v4 }
  0x88   : > { %v407_v22 = vshll.u32 %v2715_v15, 30  ;;  %v476_v34 = vor.u32 %v475_v17, %v474_v8  ;;  %vm480_vm0 = vcmp.lt.s32.totalorder %v461_v1, 1  ;;  %vm482_vm1 = vcmp.lt.s32.totalorder %v461_v1, 3 }
  0x89   : > { %v308_v33 = vclz %v2017_v10  ;;  %v479_v16 = vor.u32 %v478_v31, %v477_v23  ;;  %v485_v59 = vsel %vm483_vm15, %v473_v36, 2102212464  ;;  %v2028_v63 = vadd.s32 4294967169, %v556_v9 }
  0x8a   : > { %v329_v0 = vsel %vm2694_vm14, 0, %v327_v12  ;;  %v2724_v39 = vsub.s32 %v404_v2, %v407_v22  ;;  %vm481_vm2 = vcmp.lt.s32.totalorder %v461_v1, 2  ;;  %v489_v41 = vsel %vm483_vm15, %v476_v34, 920167782 }
  0x8b   : > { %v2018_v38 = vadd.s32 4294967294, %v308_v33  ;;  %v484_v14 = vsel %vm480_vm0, %v464_v19, %v467_v27  ;;  %v488_v62 = vsel %vm480_vm0, %v467_v27, %v470_v29  ;;  %v490_v18 = vsel %vm482_vm1, %v473_v36, %v489_v41 }
  0x8c   : > { %v410_v58 = vsub.s32 0, %v2724_v39  ;;  %v486_v4 = vsel %vm482_vm1, %v470_v29, %v485_v59  ;;  %v492_v5 = vsel %vm480_vm0, %v470_v29, %v473_v36  ;;  %v493_v9 = vsel %vm483_vm15, %v479_v16, 1326507024 }
  0x8d   : > { %vm2019_vm3 = vcmp.lt.s32.totalorder %v2018_v38, 0  ;;  %vm346_vm4 = vcmp.lt.s32.totalorder %v2567_v47, 0  ;;  %v491_v12 = vsel %vm481_vm2, %v488_v62, %v490_v18  ;;  %v494_v17 = vsel %vm482_vm1, %v476_v34, %v493_v9 }
  0x8e   : > { %v311_v3 = vsel %vm2019_vm3, 0, %v2018_v38  ;;  %v2021_v10 = vmin.u32 %v410_v58, %v2724_v39  ;;  %v495_v31 = vsel %vm481_vm2, %v492_v5, %v494_v17  ;;  %v562_v33 = vadd.s32 1, %v2028_v63 }
  0x8f   : > { %v312_v7 = vsub.s32 32, %v311_v3  ;;  %v313_v2 = vshll.u32 %v2698_v61, %v311_v3  ;;  %v316_v8 = vsub.s32 4294967266, %v311_v3  ;;  %v333_v27 = vadd.s32 3, %v329_v0 }
  0x90   : > { %v412_v29 = vclz %v2021_v10  ;;  %v487_v61 = vsel %vm481_vm2, %v484_v14, %v486_v4  ;;  %v560_v36 = vor.u32 8388608, %v2690_v21  ;;  %vm563_vm5 = vcmp.gt.s32.totalorder %v562_v33, 0 }
  0x91   : > { %v314_v19 = vshrl.u32 %v296_v6, %v312_v7  ;;  %v317_v23 = vadd.s32 127, %v316_v8  ;;  %v2743_v16 = vmul.u32.u64.low %v2685_v42, %v495_v31  ;;  %v2744_v59 = vmul.u32.u64.high %v2685_v42, %v495_v31, %v2743_v16 }
  0x92   : > { %v2022_v41 = vadd.s32 4294967294, %v412_v29  ;;  %v2747_v34 = vmul.u32.u64.low %v2685_v42, %v491_v12  ;;  %v2748_v6 = vmul.u32.u64.high %v2685_v42, %v491_v12, %v2747_v34  ;;  %v430_v1 = vsub.s32 4, %v2715_v15 }
  0x93   : > { %v315_v22 = vor.u32 %v314_v19, %v313_v2  ;;  %v318_v38 = vshll.u32 %v317_v23, 23  ;;  %v564_v14 = vsel %vm563_vm5, %v562_v33, 0  ;;  %v2752_v62 = vand.u32 3, %v333_v27 }
  0x94   : > { %v400_v18 = vadd.s32 %v2670_v25, %v2676_v35  ;;  %vm2023_vm6 = vcmp.lt.s32.totalorder %v2022_v41, 0  ;;  %v566_v3 = vand.u32 31, %v564_v14  ;;  %v503_v5 = vmul.u32 %v2685_v42, %v487_v61 }
  0x95   : > { %v319_v63 = vor.u32 4788187, %v318_v38  ;;  %v322_v0 = vcvt.s32.f32 %v315_v22  ;;  %v415_v4 = vsel %vm2023_vm6, 0, %v2022_v41  ;;  %vm505_vm7 = vc.u32 %v2744_v59, %v2747_v34 }
  0x96   : > { %vm2761_vm8 = vcmp.le.f32.partialorder %v344_v60, 0.7853982  ;;  %v416_v2 = vsub.s32 32, %v415_v4  ;;  %v417_v8 = vshll.u32 %v2724_v39, %v415_v4  ;;  %v420_v9 = vsub.s32 4294967266, %v415_v4 }
  0x97   : > { %v320_v58 = vand.u32 2147483647, %v319_v63  ;;  %v506_v25 = vadd.s32 1, %v2748_v6  ;;  %v431_v42 = vsel %vm346_vm4, %v430_v1, %v2715_v15  ;;  %v2770_v10 = vshrl.u32 %v564_v14, 5 }
  0x98   : > { %v567_v12 = vsub.s32 32, %v566_v3  ;;  %v418_v17 = vshrl.u32 %v400_v18, %v416_v2  ;;  %v421_v19 = vadd.s32 127, %v420_v9  ;;  %v569_v23 = vshll.u32 %v2414_v24, %v566_v3 }
  0x99   : > { %v323_v35 = vmul.f32 %v322_v0, %v320_v58  ;;  %v507_v60 = vsel %vm505_vm7, %v506_v25, %v2748_v6  ;;  %v572_v27 = vshll.u32 %v2415_v26, %v566_v3  ;;  %v575_v15 = vshll.u32 %v2416_v28, %v566_v3 }
  0x9a   : > { %v508_v33 = vadd.s32 %v507_v60, %v503_v5  ;;  %v570_v39 = vshrl.u32 %v2415_v26, %v567_v12  ;;  %v419_v29 = vor.u32 %v418_v17, %v417_v8  ;;  %v422_v61 = vshll.u32 %v421_v19, 23 }
  0x9b   : > { %v324_v31 = vxor.u32 2147483648, %v323_v35  ;;  %v573_v22 = vshrl.u32 %v2416_v28, %v567_v12  ;;  %v576_v41 = vshrl.u32 %v2417_v30, %v567_v12  ;;  %v578_v6 = vshll.u32 %v2417_v30, %v566_v3 }
  0x9c   : > { %v509_v16 = vadd.s32 536870912, %v508_v33  ;;  %v423_v0 = vor.u32 4788187, %v422_v61  ;;  %v426_v1 = vcvt.s32.f32 %v419_v29  ;;  %v571_v14 = vor.u32 %v570_v39, %v569_v23 }
  0x9d   : > { %v325_v38 = vsel %vm242_vm12, %v324_v31, %v323_v35  ;;  %v574_v58 = vor.u32 %v573_v22, %v572_v27  ;;  %v579_v4 = vshrl.u32 %v2418_v32, %v567_v12  ;;  %v581_v2 = vshll.u32 %v2418_v32, %v566_v3 }
  0x9e   : > { %v328_v63 = vsel %vm2694_vm14, %v2559_v43, %v325_v38  ;;  %v2785_v18 = vshrl.u32 %v509_v16, 30  ;;  %v424_v5 = vand.u32 2147483647, %v423_v0  ;;  %v582_v8 = vshrl.u32 %v2419_v40, %v567_v12 }
  0x9f   : > { %2220 = vcosq.f32 %v328_v63  ;;  %v433_v9 = vsel %vm2761_vm8, 0, %v431_v42  ;;  %v580_v25 = vor.u32 %v579_v4, %v578_v6  ;;  %vm584_vm9 = vcmp.lt.s32.totalorder %v2770_v10, 1 }
  0xa0   : > { %2222 = vsinq.f32 %v328_v63  ;;  %v511_v20 = vshll.u32 %v2785_v18, 30  ;;  %v427_v35 = vmul.f32 %v426_v1, %v424_v5  ;;  %v568_v17 = vshrl.u32 %v2414_v24, %v567_v12 }
  0xa1   : > { %v577_v19 = vor.u32 %v576_v41, %v575_v15  ;;  %v2797_v60 = vshll.u32 %v560_v36, 8  ;;  %vm335_vm10 = vcmp.lt.s32.totalorder %v2752_v62, 2  ;;  %v583_v23 = vor.u32 %v582_v8, %v581_v2 }
  0xa2   : > { %v2800_v3 = vsub.s32 %v508_v33, %v511_v20  ;;  %vm586_vm11 = vcmp.lt.s32.totalorder %v2770_v10, 3  ;;  %vm587_vm12 = vcmp.lt.s32.totalorder %v2770_v10, 4  ;;  %vm332_vm13 = vweird.f32 %v2559_v43 }
  0xa3   : > { %v428_v42 = vxor.u32 2147483648, %v427_v35  ;;  %vm450_vm14 = vcmp.lt.s32.totalorder %v2569_v48, 0  ;;  %vm585_vm15 = vcmp.lt.s32.totalorder %v2770_v10, 2  ;;  %v589_v21 = vsel %vm587_vm12, %v577_v19, 2102212464 }
  0xa4   : > { %v592_v36 = vsel %vm584_vm9, %v571_v14, %v574_v58  ;;  %vm336_vm0 = vcmp.eq.s32.totalorder %v2752_v62, 0  ;;  %v437_v12 = vadd.s32 3, %v433_v9  ;;  %v514_v31 = vsub.s32 0, %v2800_v3 }
  0xa5   : > { %v593_v33 = vsel %vm587_vm12, %v580_v25, 920167782  ;;  %v429_v39 = vsel %vm346_vm4, %v428_v42, %v427_v35  ;;  %v588_v27 = vsel %vm584_vm9, %v568_v17, %v571_v14  ;;  %v590_v29 = vsel %vm586_vm11, %v574_v58, %v589_v21 }
  0xa6   : > { %v594_v61 = vsel %vm586_vm11, %v577_v19, %v593_v33  ;;  %v432_v22 = vsel %vm2761_vm8, %v2567_v47, %v429_v39  ;;  %vm2829_vm1 = vcmp.le.f32.partialorder %v448_v11, 0.7853982  ;;  %v2025_v38 = vmin.u32 %v514_v31, %v2800_v3 }
  0xa7   : > { %v595_v16 = vsel %vm585_vm15, %v592_v36, %v594_v61  ;;  %v596_v41 = vsel %vm584_vm9, %v574_v58, %v577_v19  ;;  %2224 = vcosq.f32 %v432_v22  ;;  %v597_v6 = vsel %vm587_vm12, %v583_v23, 1326507024 }
  0xa8   : > { %v2841_v7 = vmul.u32.u64.low %v2797_v60, %v595_v16  ;;  %v2842_v63 = vmul.u32.u64.high %v2797_v60, %v595_v16, %v2841_v7  ;;  %vm339_vm2 = vcmp.eq.s32.totalorder %v2752_v62, 2  ;;  %2226 = vsinq.f32 %v432_v22 }
  0xa9   : > { %v2221_v11 = vpop.eup %2220  ;;  %v516_v0 = vclz %v2025_v38  ;;  %v534_v1 = vsub.s32 4, %v2785_v18  ;;  %v438_v4 = vand.u32 3, %v437_v12  ;;  %v504_v5 = vadd.s32 %v2747_v34, %v2744_v59 }
  0xaa   : > { %v2223_v14 = vpop.eup %2222  ;;  %v340_v58 = vxor.u32 2147483648, %v2221_v11  ;;  %v598_v2 = vsel %vm586_vm11, %v580_v25, %v597_v6  ;;  %v591_v20 = vsel %vm585_vm15, %v588_v27, %v590_v29  ;;  %v656_v42 = vand.u32 2147483647, %v2561_v44 }
  0xab   : > { %v337_v8 = vxor.u32 2147483648, %v2223_v14  ;;  %v2026_v9 = vadd.s32 4294967294, %v516_v0  ;;  %v599_v35 = vsel %vm585_vm15, %v596_v41, %v598_v2  ;;  %vm436_vm3 = vweird.f32 %v2567_v47 }
  0xac   : > { %v341_v17 = vsel %vm339_vm2, %v340_v58, %v2223_v14  ;;  %v2860_v19 = vmul.u32.u64.low %v2797_v60, %v599_v35  ;;  %v2861_v23 = vmul.u32.u64.high %v2797_v60, %v599_v35, %v2860_v19  ;;  %v535_v34 = vsel %vm450_vm14, %v534_v1, %v2785_v18 }
  0xad   : > { %v338_v59 = vsel %vm336_vm0, %v2221_v11, %v337_v8  ;;  %vm2027_vm4 = vcmp.lt.s32.totalorder %v2026_v9, 0  ;;  %v610_v10 = vadd.s32 1, %v2842_v63  ;;  %v607_v36 = vmul.u32 %v2797_v60, %v591_v20 }
  0xae   : > { %v342_v25 = vsel %vm335_vm10, %v338_v59, %v341_v17  ;;  %v519_v21 = vsel %vm2027_vm4, 0, %v2026_v9  ;;  %v659_v12 = vand.u32 2139095040, %v2561_v44  ;;  %v537_v18 = vsel %vm2829_vm1, 0, %v535_v34 }
  0xaf   : > { %v343_v31 = vsel %vm332_vm13, nan, %v342_v25  ;;  %v520_v33 = vsub.s32 32, %v519_v21  ;;  %v521_v39 = vshll.u32 %v2800_v3, %v519_v21  ;;  %v524_v27 = vsub.s32 4294967266, %v519_v21 }
  0xb0   : > { %vm609_vm5 = vc.u32 %v2861_v23, %v2841_v7  ;;  %v660_v62 = vshrl.u32 %v659_v12, 23  ;;  %v663_v29 = vand.u32 8388607, %v656_v42  ;;  %1904 = vst [vmem:[%s2885_s3] sm:$0xff] %v343_v31  ;;  %vm439_vm6 = vcmp.lt.s32.totalorder %v438_v4, 2 }
  0xb1   : > { %v522_v43 = vshrl.u32 %v504_v5, %v520_v33  ;;  %v525_v60 = vadd.s32 127, %v524_v27  ;;  %v611_v3 = vsel %vm609_vm5, %v610_v10, %v2842_v63  ;;  %v2225_v61 = vpop.eup %2224  ;;  %vm440_vm7 = vcmp.eq.s32.totalorder %v438_v4, 0 }
  0xb2   : > { %vm443_vm8 = vcmp.eq.s32.totalorder %v438_v4, 2  ;;  %v612_v22 = vadd.s32 %v611_v3, %v607_v36  ;;  %v2032_v38 = vadd.s32 4294967169, %v660_v62  ;;  %v2227_v16 = vpop.eup %2226  ;;  %v444_v41 = vxor.u32 2147483648, %v2225_v61 }
  0xb3   : > { %v523_v6 = vor.u32 %v522_v43, %v521_v39  ;;  %v526_v11 = vshll.u32 %v525_v60, 23  ;;  %v541_v0 = vadd.s32 3, %v537_v18  ;;  %v441_v1 = vxor.u32 2147483648, %v2227_v16 }
  0xb4   : > { %v613_v14 = vadd.s32 536870912, %v612_v22  ;;  %v664_v58 = vor.u32 8388608, %v663_v29  ;;  %v666_v2 = vadd.s32 1, %v2032_v38  ;;  %v445_v8 = vsel %vm443_vm8, %v444_v41, %v2227_v16 }
  0xb5   : > { %v527_v9 = vor.u32 4788187, %v526_v11  ;;  %v530_v5 = vcvt.s32.f32 %v523_v6  ;;  %v763_v63 = vand.u32 2139095040, %v2571_v49  ;;  %v442_v20 = vsel %vm440_vm7, %v2225_v61, %v441_v1 }
  0xb6   : > { %v614_v35 = vshrl.u32 %v613_v14, 30  ;;  %vm667_vm9 = vcmp.gt.s32.totalorder %v666_v2, 0  ;;  %v760_v17 = vand.u32 2147483647, %v2571_v49  ;;  %v446_v19 = vsel %vm439_vm6, %v442_v20, %v445_v8 }
  0xb7   : > { %v528_v59 = vand.u32 2147483647, %v527_v9  ;;  %v668_v34 = vsel %vm667_vm9, %v666_v2, 0  ;;  %v447_v10 = vsel %vm436_vm3, nan, %v446_v19  ;;  %v764_v21 = vshrl.u32 %v763_v63, 23 }
  0xb8   : > { %v615_v25 = vshll.u32 %v614_v35, 30  ;;  %v2895_v12 = vand.u32 3, %v541_v0  ;;  %vm554_vm10 = vcmp.lt.s32.totalorder %v2599_v13, 0  ;;  %v670_v31 = vand.u32 31, %v668_v34  ;;  %1905 = vst [vmem:[%s2885_s3 + $0x8] sm:$0xff] %v447_v10 }
  0xb9   : > { %v531_v36 = vmul.f32 %v530_v5, %v528_v59  ;;  %v608_v33 = vadd.s32 %v2841_v7, %v2861_v23  ;;  %v2903_v4 = vshll.u32 %v664_v58, 8  ;;  %v2907_v47 = vand.u32 8388607, %v760_v17 }
  0xba   : > { %v2901_v39 = vsub.s32 %v612_v22, %v615_v25  ;;  %v638_v18 = vsub.s32 4, %v614_v35  ;;  %v2909_v62 = vshrl.u32 %v668_v34, 5  ;;  %v671_v29 = vsub.s32 32, %v670_v31 }
  0xbb   : > { %v532_v27 = vxor.u32 2147483648, %v531_v36  ;;  %v673_v60 = vshll.u32 %v2414_v24, %v670_v31  ;;  %v676_v3 = vshll.u32 %v2415_v26, %v670_v31  ;;  %v2036_v7 = vadd.s32 4294967169, %v764_v21 }
  0xbc   : > { %v618_v43 = vsub.s32 0, %v2901_v39  ;;  %v674_v61 = vshrl.u32 %v2415_v26, %v671_v29  ;;  %v677_v22 = vshrl.u32 %v2416_v28, %v671_v29  ;;  %v679_v38 = vshll.u32 %v2416_v28, %v670_v31 }
  0xbd   : > { %v533_v23 = vsel %vm450_vm14, %v532_v27, %v531_v36  ;;  %v680_v6 = vshrl.u32 %v2417_v30, %v671_v29  ;;  %v768_v11 = vor.u32 8388608, %v2907_v47  ;;  %v2927_v0 = vsel %vm554_vm10, %v638_v18, %v614_v35 }
  0xbe   : > { %v536_v16 = vsel %vm2829_vm1, %v2569_v48, %v533_v23  ;;  %v2029_v41 = vmin.u32 %v618_v43, %v2901_v39  ;;  %v672_v1 = vshrl.u32 %v2414_v24, %v671_v29  ;;  %v682_v14 = vshll.u32 %v2417_v30, %v670_v31 }
  0xbf   : > { %2228 = vcosq.f32 %v536_v16  ;;  %vm2933_vm11 = vcmp.le.f32.partialorder %v552_v37, 0.7853982  ;;  %v675_v2 = vor.u32 %v674_v61, %v673_v60  ;;  %v678_v8 = vor.u32 %v677_v22, %v676_v3 }
  0xc0   : > { %2230 = vsinq.f32 %v536_v16  ;;  %v620_v58 = vclz %v2029_v41  ;;  %vm547_vm12 = vcmp.eq.s32.totalorder %v2895_v12, 2  ;;  %v681_v9 = vor.u32 %v680_v6, %v679_v38 }
  0xc1   : > { %v683_v5 = vshrl.u32 %v2418_v32, %v671_v29  ;;  %v685_v63 = vshll.u32 %v2418_v32, %v670_v31  ;;  %vm688_vm13 = vcmp.lt.s32.totalorder %v2909_v62, 1  ;;  %vm544_vm14 = vcmp.eq.s32.totalorder %v2895_v12, 0 }
  0xc2   : > { %v2030_v20 = vadd.s32 4294967294, %v620_v58  ;;  %v686_v37 = vshrl.u32 %v2419_v40, %v671_v29  ;;  %vm689_vm15 = vcmp.lt.s32.totalorder %v2909_v62, 2  ;;  %vm691_vm0 = vcmp.lt.s32.totalorder %v2909_v62, 4 }
  0xc3   : > { %vm543_vm1 = vcmp.lt.s32.totalorder %v2895_v12, 2  ;;  %v684_v35 = vor.u32 %v683_v5, %v682_v14  ;;  %vm690_vm2 = vcmp.lt.s32.totalorder %v2909_v62, 3  ;;  %v692_v19 = vsel %vm688_vm13, %v672_v1, %v675_v2 }
  0xc4   : > { %v693_v59 = vsel %vm691_vm0, %v681_v9, 2102212464  ;;  %vm540_vm3 = vweird.f32 %v2569_v48  ;;  %vm2031_vm4 = vcmp.lt.s32.totalorder %v2030_v20, 0  ;;  %v687_v34 = vor.u32 %v686_v37, %v685_v63 }
  0xc5   : > { %v694_v10 = vsel %vm690_vm2, %v678_v8, %v693_v59  ;;  %v696_v25 = vsel %vm688_vm13, %v675_v2, %v678_v8  ;;  %v623_v21 = vsel %vm2031_vm4, 0, %v2030_v20  ;;  %v697_v36 = vsel %vm691_vm0, %v684_v35, 920167782 }
  0xc6   : > { %v700_v31 = vsel %vm688_vm13, %v678_v8, %v681_v9  ;;  %v770_v27 = vadd.s32 1, %v2036_v7  ;;  %v624_v18 = vsub.s32 32, %v623_v21  ;;  %v625_v29 = vshll.u32 %v2901_v39, %v623_v21 }
  0xc7   : > { %v628_v43 = vsub.s32 4294967266, %v623_v21  ;;  %v698_v60 = vsel %vm690_vm2, %v681_v9, %v697_v36  ;;  %v695_v3 = vsel %vm689_vm15, %v692_v19, %v694_v10  ;;  %v701_v61 = vsel %vm691_vm0, %v687_v34, 1326507024 }
  0xc8   : > { %v699_v23 = vsel %vm689_vm15, %v696_v25, %v698_v60  ;;  %vm771_vm5 = vcmp.gt.s32.totalorder %v770_v27, 0  ;;  %v626_v22 = vshrl.u32 %v608_v33, %v624_v18  ;;  %v702_v7 = vsel %vm690_vm2, %v684_v35, %v701_v61 }
  0xc9   : > { %v629_v38 = vadd.s32 127, %v628_v43  ;;  %v772_v39 = vsel %vm771_vm5, %v770_v27, 0  ;;  %v2229_v16 = vpop.eup %2228  ;;  %v641_v41 = vsel %vm2933_vm11, 0, %v2927_v0  ;;  %v703_v6 = vsel %vm689_vm15, %v700_v31, %v702_v7 }
  0xca   : > { %v2977_v1 = vmul.u32.u64.low %v2903_v4, %v699_v23  ;;  %v2978_v14 = vmul.u32.u64.high %v2903_v4, %v699_v23, %v2977_v1  ;;  %v2231_v58 = vpop.eup %2230  ;;  %v548_v33 = vxor.u32 2147483648, %v2229_v16  ;;  %v627_v2 = vor.u32 %v626_v22, %v625_v29 }
  0xcb   : > { %v630_v8 = vshll.u32 %v629_v38, 23  ;;  %v774_v9 = vand.u32 31, %v772_v39  ;;  %v545_v5 = vxor.u32 2147483648, %v2231_v58  ;;  %v711_v0 = vmul.u32 %v2903_v4, %v695_v3 }
  0xcc   : > { %v2982_v63 = vmul.u32.u64.low %v2903_v4, %v703_v6  ;;  %v2983_v20 = vmul.u32.u64.high %v2903_v4, %v703_v6, %v2982_v63  ;;  %v549_v62 = vsel %vm547_vm12, %v548_v33, %v2231_v58  ;;  %v634_v35 = vcvt.s32.f32 %v627_v2 }
  0xcd   : > { %v631_v37 = vor.u32 4788187, %v630_v8  ;;  %v775_v19 = vsub.s32 32, %v774_v9  ;;  %v546_v59 = vsel %vm544_vm14, %v2229_v16, %v545_v5  ;;  %v714_v34 = vadd.s32 1, %v2978_v14 }
  0xce   : > { %v777_v10 = vshll.u32 %v2414_v24, %v774_v9  ;;  %v780_v25 = vshll.u32 %v2415_v26, %v774_v9  ;;  %v550_v21 = vsel %vm543_vm1, %v546_v59, %v549_v62  ;;  %v645_v36 = vadd.s32 3, %v641_v41 }
  0xcf   : > { %v632_v4 = vand.u32 2147483647, %v631_v37  ;;  %v778_v31 = vshrl.u32 %v2415_v26, %v775_v19  ;;  %v551_v27 = vsel %vm540_vm3, nan, %v550_v21  ;;  %vm713_vm6 = vc.u32 %v2983_v20, %v2977_v1 }
  0xd0   : > { %v773_v18 = vshrl.u32 %v772_v39, 5  ;;  %v781_v29 = vshrl.u32 %v2416_v28, %v775_v19  ;;  %v715_v60 = vsel %vm713_vm6, %v714_v34, %v2978_v14  ;;  %v783_v12 = vshll.u32 %v2416_v28, %v774_v9  ;;  %1906 = vst [vmem:[%s2885_s3 + $0x10] sm:$0xff] %v551_v27 }
  0xd1   : > { %v635_v43 = vmul.f32 %v634_v35, %v632_v4  ;;  %v779_v3 = vor.u32 %v778_v31, %v777_v10  ;;  %v716_v23 = vadd.s32 %v715_v60, %v711_v0  ;;  %v784_v22 = vshrl.u32 %v2417_v30, %v775_v19 }
  0xd2   : > { %v782_v61 = vor.u32 %v781_v29, %v780_v25  ;;  %v786_v48 = vshll.u32 %v2417_v30, %v774_v9  ;;  %v787_v7 = vshrl.u32 %v2418_v32, %v775_v19  ;;  %v789_v39 = vshll.u32 %v2418_v32, %v774_v9 }
  0xd3   : > { %v636_v38 = vxor.u32 2147483648, %v635_v43  ;;  %v790_v16 = vshrl.u32 %v2419_v40, %v775_v19  ;;  %v717_v41 = vadd.s32 536870912, %v716_v23  ;;  %v776_v6 = vshrl.u32 %v2414_v24, %v775_v19 }
  0xd4   : > { %v785_v14 = vor.u32 %v784_v22, %v783_v12  ;;  %vm792_vm7 = vcmp.lt.s32.totalorder %v773_v18, 1  ;;  %v788_v33 = vor.u32 %v787_v7, %v786_v48  ;;  %vm795_vm8 = vcmp.lt.s32.totalorder %v773_v18, 4 }
  0xd5   : > { %v637_v58 = vsel %vm554_vm10, %v636_v38, %v635_v43  ;;  %v791_v2 = vor.u32 %v790_v16, %v789_v39  ;;  %v718_v5 = vshrl.u32 %v717_v41, 30  ;;  %vm794_vm9 = vcmp.lt.s32.totalorder %v773_v18, 3 }
  0xd6   : > { %v640_v8 = vsel %vm2933_vm11, %v2599_v13, %v637_v58  ;;  %v797_v9 = vsel %vm795_vm8, %v785_v14, 2102212464  ;;  %vm793_vm12 = vcmp.lt.s32.totalorder %v773_v18, 2  ;;  %v800_v63 = vsel %vm792_vm7, %v779_v3, %v782_v61 }
  0xd7   : > { %2232 = vcosq.f32 %v640_v8  ;;  %v801_v0 = vsel %vm795_vm8, %v788_v33, 920167782  ;;  %v719_v62 = vshll.u32 %v718_v5, 30  ;;  %v796_v37 = vsel %vm792_vm7, %v776_v6, %v779_v3 }
  0xd8   : > { %2234 = vsinq.f32 %v640_v8  ;;  %v798_v35 = vsel %vm794_vm9, %v782_v61, %v797_v9  ;;  %v802_v19 = vsel %vm794_vm9, %v785_v14, %v801_v0  ;;  %v804_v59 = vsel %vm792_vm7, %v782_v61, %v785_v14 }
  0xd9   : > { %v805_v15 = vsel %vm795_vm8, %v791_v2, 1326507024  ;;  %v808_v34 = vshll.u32 %v768_v11, 8  ;;  %v720_v10 = vsub.s32 %v716_v23, %v719_v62  ;;  %v742_v25 = vsub.s32 4, %v718_v5 }
  0xda   : > { %v803_v21 = vsel %vm793_vm12, %v800_v63, %v802_v19  ;;  %v806_v4 = vsel %vm794_vm9, %v788_v33, %v805_v15  ;;  %v646_v31 = vand.u32 3, %v645_v36  ;;  %v799_v3 = vsel %vm793_vm12, %v796_v37, %v798_v35 }
  0xdb   : > { %v807_v27 = vsel %vm793_vm12, %v804_v59, %v806_v4  ;;  %v3025_v29 = vmul.u32.u64.low %v808_v34, %v803_v21  ;;  %v3026_v43 = vmul.u32.u64.high %v808_v34, %v803_v21, %v3025_v29  ;;  %v722_v60 = vsub.s32 0, %v720_v10 }
  0xdc   : > { %v3029_v12 = vmul.u32.u64.low %v808_v34, %v807_v27  ;;  %v3030_v61 = vmul.u32.u64.high %v808_v34, %v807_v27, %v3029_v12  ;;  %vm658_vm10 = vcmp.lt.s32.totalorder %v2561_v44, 0  ;;  %v867_v23 = vand.u32 2139095040, %v2573_v50 }
  0xdd   : > { %v2033_v47 = vmin.u32 %v722_v60, %v720_v10  ;;  %v743_v11 = vsel %vm658_vm10, %v742_v25, %v718_v5  ;;  %vm644_vm11 = vweird.f32 %v2599_v13  ;;  %v815_v36 = vmul.u32 %v808_v34, %v799_v3 }
  0xde   : > { %v818_v22 = vadd.s32 1, %v3026_v43  ;;  %vm647_vm13 = vcmp.lt.s32.totalorder %v646_v31, 2  ;;  %vm3040_vm14 = vcmp.le.f32.partialorder %v656_v42, 0.7853982  ;;  %v864_v38 = vand.u32 2147483647, %v2573_v50 }
  0xdf   : > { %v724_v48 = vclz %v2033_v47  ;;  %vm651_vm15 = vcmp.eq.s32.totalorder %v646_v31, 2  ;;  %v745_v39 = vsel %vm3040_vm14, 0, %v743_v11  ;;  %vm817_vm0 = vc.u32 %v3030_v61, %v3025_v29 }
  0xe0   : > { %v868_v16 = vshrl.u32 %v867_v23, 23  ;;  %vm648_vm1 = vcmp.eq.s32.totalorder %v646_v31, 0  ;;  %v819_v42 = vsel %vm817_vm0, %v818_v22, %v3026_v43  ;;  %v712_v33 = vadd.s32 %v2977_v1, %v2983_v20 }
  0xe1   : > { %v2233_v7 = vpop.eup %2232  ;;  %v2034_v14 = vadd.s32 4294967294, %v724_v48  ;;  %v820_v2 = vadd.s32 %v819_v42, %v815_v36  ;;  %v749_v9 = vadd.s32 3, %v745_v39  ;;  %v871_v63 = vand.u32 8388607, %v864_v38 }
  0xe2   : > { %v2235_v41 = vpop.eup %2234  ;;  %v652_v6 = vxor.u32 2147483648, %v2233_v7  ;;  %v2040_v8 = vadd.s32 4294967169, %v868_v16  ;;  %v971_v25 = vand.u32 2139095040, %v2575_v51  ;;  %vm762_vm4 = vcmp.lt.s32.totalorder %v2571_v49, 0 }
  0xe3   : > { %v649_v58 = vxor.u32 2147483648, %v2235_v41  ;;  %vm2035_vm2 = vcmp.lt.s32.totalorder %v2034_v14, 0  ;;  %v821_v37 = vadd.s32 536870912, %v820_v2  ;;  %v872_v27 = vor.u32 8388608, %v871_v63 }
  0xe4   : > { %v653_v5 = vsel %vm651_vm15, %v652_v6, %v2235_v41  ;;  %v727_v62 = vsel %vm2035_vm2, 0, %v2034_v14  ;;  %v874_v35 = vadd.s32 1, %v2040_v8  ;;  %v816_v13 = vadd.s32 %v3025_v29, %v3030_v61 }
  0xe5   : > { %v650_v0 = vsel %vm648_vm1, %v2233_v7, %v649_v58  ;;  %v728_v59 = vsub.s32 32, %v727_v62  ;;  %v729_v15 = vshll.u32 %v720_v10, %v727_v62  ;;  %v732_v34 = vsub.s32 4294967266, %v727_v62 }
  0xe6   : > { %v654_v19 = vsel %vm647_vm13, %v650_v0, %v653_v5  ;;  %v822_v20 = vshrl.u32 %v821_v37, 30  ;;  %vm875_vm3 = vcmp.gt.s32.totalorder %v874_v35, 0  ;;  %v3059_v10 = vand.u32 3, %v749_v9 }
  0xe7   : > { %v655_v1 = vsel %vm644_vm11, nan, %v654_v19  ;;  %v730_v21 = vshrl.u32 %v712_v33, %v728_v59  ;;  %v733_v4 = vadd.s32 127, %v732_v34  ;;  %v876_v43 = vsel %vm875_vm3, %v874_v35, 0 }
  0xe8   : > { %1907 = vst [vmem:[%s2885_s3 + $0x18] sm:$0xff] %v655_v1  ;;  %v823_v60 = vshll.u32 %v822_v20, 30  ;;  %v878_v31 = vand.u32 31, %v876_v43  ;;  %v968_v23 = vand.u32 2147483647, %v2575_v51  ;;  %v972_v36 = vshrl.u32 %v971_v25, 23 }
  0xe9   : > { %v731_v3 = vor.u32 %v730_v21, %v729_v15  ;;  %v734_v12 = vshll.u32 %v733_v4, 23  ;;  %v846_v7 = vsub.s32 4, %v822_v20  ;;  %v3065_v39 = vshll.u32 %v872_v27, 8 }
  0xea   : > { %v3062_v47 = vsub.s32 %v820_v2, %v823_v60  ;;  %v879_v11 = vsub.s32 32, %v878_v31  ;;  %v881_v41 = vshll.u32 %v2414_v24, %v878_v31  ;;  %v884_v14 = vshll.u32 %v2415_v26, %v878_v31 }
  0xeb   : > { %v735_v22 = vor.u32 4788187, %v734_v12  ;;  %v738_v48 = vcvt.s32.f32 %v731_v3  ;;  %v887_v42 = vshll.u32 %v2416_v28, %v878_v31  ;;  %vm3076_vm5 = vcmp.le.f32.partialorder %v760_v17, 0.7853982 }
  0xec   : > { %v826_v16 = vsub.s32 0, %v3062_v47  ;;  %v882_v6 = vshrl.u32 %v2415_v26, %v879_v11  ;;  %v885_v61 = vshrl.u32 %v2416_v28, %v879_v11  ;;  %v888_v58 = vshrl.u32 %v2417_v30, %v879_v11 }
  0xed   : > { %v736_v29 = vand.u32 2147483647, %v735_v22  ;;  %v877_v8 = vshrl.u32 %v876_v43, 5  ;;  %v890_v5 = vshll.u32 %v2417_v30, %v878_v31  ;;  %v2044_v9 = vadd.s32 4294967169, %v972_v36 }
  0xee   : > { %v2037_v2 = vmin.u32 %v826_v16, %v3062_v47  ;;  %v847_v0 = vsel %vm762_vm4, %v846_v7, %v822_v20  ;;  %v880_v62 = vshrl.u32 %v2414_v24, %v879_v11  ;;  %v891_v37 = vshrl.u32 %v2418_v32, %v879_v11 }
  0xef   : > { %v739_v63 = vmul.f32 %v738_v48, %v736_v29  ;;  %v883_v19 = vor.u32 %v882_v6, %v881_v41  ;;  %v886_v17 = vor.u32 %v885_v61, %v884_v14  ;;  %v889_v59 = vor.u32 %v888_v58, %v887_v42 }
  0xf0   : > { %v828_v35 = vclz %v2037_v2  ;;  %v892_v34 = vor.u32 %v891_v37, %v890_v5  ;;  %v893_v1 = vshll.u32 %v2418_v32, %v878_v31  ;;  %v894_v25 = vshrl.u32 %v2419_v40, %v879_v11 }
  0xf1   : > { %v740_v15 = vxor.u32 2147483648, %v739_v63  ;;  %vm896_vm6 = vcmp.lt.s32.totalorder %v877_v8, 1  ;;  %vm897_vm7 = vcmp.lt.s32.totalorder %v877_v8, 2  ;;  %vm898_vm8 = vcmp.lt.s32.totalorder %v877_v8, 3 }
  0xf2   : > { %v2038_v21 = vadd.s32 4294967294, %v828_v35  ;;  %v895_v4 = vor.u32 %v894_v25, %v893_v1  ;;  %vm899_vm9 = vcmp.lt.s32.totalorder %v877_v8, 4  ;;  %v900_v27 = vsel %vm896_vm6, %v880_v62, %v883_v19 }
  0xf3   : > { %v741_v20 = vsel %vm658_vm10, %v740_v15, %v739_v63  ;;  %v901_v60 = vsel %vm899_vm9, %v889_v59, 2102212464  ;;  %v904_v31 = vsel %vm896_vm6, %v883_v19, %v886_v17  ;;  %v905_v11 = vsel %vm899_vm9, %v892_v34, 920167782 }
  0xf4   : > { %v744_v43 = vsel %vm3040_vm14, %v2561_v44, %v741_v20  ;;  %vm2039_vm12 = vcmp.lt.s32.totalorder %v2038_v21, 0  ;;  %v902_v12 = vsel %vm898_vm8, %v886_v17, %v901_v60  ;;  %v849_v18 = vsel %vm3076_vm5, 0, %v847_v0 }
  0xf5   : > { %2236 = vcosq.f32 %v744_v43  ;;  %v831_v3 = vsel %vm2039_vm12, 0, %v2038_v21  ;;  %v906_v7 = vsel %vm898_vm8, %v889_v59, %v905_v11  ;;  %v908_v16 = vsel %vm896_vm6, %v886_v17, %v889_v59 }
  0xf6   : > { %2238 = vsinq.f32 %v744_v43  ;;  %v832_v36 = vsub.s32 32, %v831_v3  ;;  %v833_v22 = vshll.u32 %v3062_v47, %v831_v3  ;;  %v836_v48 = vsub.s32 4294967266, %v831_v3 }
  0xf7   : > { %v909_v41 = vsel %vm899_vm9, %v895_v4, 1326507024  ;;  %v907_v29 = vsel %vm897_vm7, %v904_v31, %v906_v7  ;;  %v903_v42 = vsel %vm897_vm7, %v900_v27, %v902_v12  ;;  %v978_v37 = vadd.s32 1, %v2044_v9 }
  0xf8   : > { %v834_v6 = vshrl.u32 %v816_v13, %v832_v36  ;;  %v837_v14 = vadd.s32 127, %v836_v48  ;;  %v910_v61 = vsel %vm898_vm8, %v892_v34, %v909_v41  ;;  %v975_v13 = vand.u32 8388607, %v968_v23 }
  0xf9   : > { %v911_v47 = vsel %vm897_vm7, %v908_v16, %v910_v61  ;;  %v3109_v58 = vmul.u32.u64.low %v3065_v39, %v907_v29  ;;  %v3110_v2 = vmul.u32.u64.high %v3065_v39, %v907_v29, %v3109_v58  ;;  %v853_v17 = vadd.s32 3, %v849_v18 }
  0xfa   : > { %v835_v5 = vor.u32 %v834_v6, %v833_v22  ;;  %v838_v63 = vshll.u32 %v837_v14, 23  ;;  %v3114_v0 = vmul.u32.u64.low %v3065_v39, %v911_v47  ;;  %v3115_v62 = vmul.u32.u64.high %v3065_v39, %v911_v47, %v3114_v0 }
  0xfb   : > { %v919_v8 = vmul.u32 %v3065_v39, %v903_v42  ;;  %vm748_vm10 = vweird.f32 %v2561_v44  ;;  %vm751_vm11 = vcmp.lt.s32.totalorder %v3059_v10, 2  ;;  %v922_v59 = vadd.s32 1, %v3110_v2 }
  0xfc   : > { %v839_v35 = vor.u32 4788187, %v838_v63  ;;  %v842_v19 = vcvt.s32.f32 %v835_v5  ;;  %vm979_vm13 = vcmp.gt.s32.totalorder %v978_v37, 0  ;;  %vm752_vm14 = vcmp.eq.s32.totalorder %v3059_v10, 0 }
  0xfd   : > { %vm921_vm15 = vc.u32 %v3115_v62, %v3109_v58  ;;  %v980_v34 = vsel %vm979_vm13, %v978_v37, 0  ;;  %vm755_vm0 = vcmp.eq.s32.totalorder %v3059_v10, 2  ;;  %v976_v39 = vor.u32 8388608, %v975_v13 }
  0xfe   : > { %v840_v15 = vand.u32 2147483647, %v839_v35  ;;  %v923_v1 = vsel %vm921_vm15, %v922_v59, %v3110_v2  ;;  %v982_v25 = vand.u32 31, %v980_v34  ;;  %v3128_v27 = vand.u32 3, %v853_v17 }
  0xff   : > { %v2237_v9 = vpop.eup %2236  ;;  %v924_v43 = vadd.s32 %v923_v1, %v919_v8  ;;  %v3130_v31 = vshrl.u32 %v980_v34, 5  ;;  %v1075_v5 = vand.u32 2139095040, %v2563_v45  ;;  %vm866_vm2 = vcmp.lt.s32.totalorder %v2573_v50, 0 }
 0x100   : > { %v2239_v21 = vpop.eup %2238  ;;  %v756_v20 = vxor.u32 2147483648, %v2237_v9  ;;  %v843_v4 = vmul.f32 %v842_v19, %v840_v15  ;;  %v983_v3 = vsub.s32 32, %v982_v25  ;;  %v985_v12 = vshll.u32 %v2414_v24, %v982_v25 }
 0x101   : > { %v753_v60 = vxor.u32 2147483648, %v2239_v21  ;;  %v925_v22 = vadd.s32 536870912, %v924_v43  ;;  %v988_v48 = vshll.u32 %v2415_v26, %v982_v25  ;;  %v991_v41 = vshll.u32 %v2416_v28, %v982_v25 }
 0x102   : > { %v757_v11 = vsel %vm755_vm0, %v756_v20, %v2239_v21  ;;  %v844_v36 = vxor.u32 2147483648, %v843_v4  ;;  %v986_v7 = vshrl.u32 %v2415_v26, %v983_v3  ;;  %v989_v16 = vshrl.u32 %v2416_v28, %v983_v3 }
 0x103   : > { %v754_v18 = vsel %vm752_vm14, %v2237_v9, %v753_v60  ;;  %v926_v29 = vshrl.u32 %v925_v22, 30  ;;  %v992_v61 = vshrl.u32 %v2417_v30, %v983_v3  ;;  %v984_v2 = vshrl.u32 %v2414_v24, %v983_v3 }
 0x104   : > { %v758_v6 = vsel %vm751_vm11, %v754_v18, %v757_v11  ;;  %v845_v14 = vsel %vm762_vm4, %v844_v36, %v843_v4  ;;  %v987_v63 = vor.u32 %v986_v7, %v985_v12  ;;  %v990_v0 = vor.u32 %v989_v16, %v988_v48 }
 0x105   : > { %v759_v42 = vsel %vm748_vm10, nan, %v758_v6  ;;  %v848_v47 = vsel %vm3076_vm5, %v2571_v49, %v845_v14  ;;  %v927_v10 = vshll.u32 %v926_v29, 30  ;;  %v994_v13 = vshll.u32 %v2417_v30, %v982_v25 }
 0x106   : > { %2240 = vcosq.f32 %v848_v47  ;;  %1908 = vst [vmem:[%s2885_s3 + $0x20] sm:$0xff] %v759_v42  ;;  %v995_v37 = vshrl.u32 %v2418_v32, %v983_v3  ;;  %v997_v44 = vshll.u32 %v2418_v32, %v982_v25  ;;  %v993_v33 = vor.u32 %v992_v61, %v991_v41 }
 0x107   : > { %2242 = vsinq.f32 %v848_v47  ;;  %v3155_v35 = vsub.s32 %v924_v43, %v927_v10  ;;  %v998_v19 = vshrl.u32 %v2419_v40, %v983_v3  ;;  %vm1000_vm1 = vcmp.lt.s32.totalorder %v3130_v31, 1 }
 0x108   : > { %v996_v17 = vor.u32 %v995_v37, %v994_v13  ;;  %vm1002_vm3 = vcmp.lt.s32.totalorder %v3130_v31, 3  ;;  %v1016_v8 = vshll.u32 %v976_v39, 8  ;;  %vm855_vm4 = vcmp.lt.s32.totalorder %v3128_v27, 2 }
 0x109   : > { %v930_v59 = vsub.s32 0, %v3155_v35  ;;  %v999_v15 = vor.u32 %v998_v19, %v997_v44  ;;  %vm1001_vm5 = vcmp.lt.s32.totalorder %v3130_v31, 2  ;;  %vm1003_vm6 = vcmp.lt.s32.totalorder %v3130_v31, 4 }
 0x10a   : > { %vm852_vm7 = vweird.f32 %v2571_v49  ;;  %v1005_v34 = vsel %vm1003_vm6, %v993_v33, 2102212464  ;;  %v1008_v9 = vsel %vm1000_vm1, %v987_v63, %v990_v0  ;;  %v1009_v1 = vsel %vm1003_vm6, %v996_v17, 920167782 }
 0x10b   : > { %v1072_v25 = vand.u32 2147483647, %v2563_v45  ;;  %vm3171_vm8 = vcmp.le.f32.partialorder %v864_v38, 0.7853982  ;;  %v2041_v21 = vmin.u32 %v930_v59, %v3155_v35  ;;  %v1004_v20 = vsel %vm1000_vm1, %v984_v2, %v987_v63 }
 0x10c   : > { %v1010_v4 = vsel %vm1002_vm3, %v993_v33, %v1009_v1  ;;  %v1076_v43 = vshrl.u32 %v1075_v5, 23  ;;  %v1006_v60 = vsel %vm1002_vm3, %v990_v0, %v1005_v34  ;;  %v1012_v38 = vsel %vm1000_vm1, %v990_v0, %v993_v33 }
 0x10d   : > { %v1011_v3 = vsel %vm1001_vm5, %v1008_v9, %v1010_v4  ;;  %v1013_v12 = vsel %vm1003_vm6, %v999_v15, 1326507024  ;;  %vm856_vm9 = vcmp.eq.s32.totalorder %v3128_v27, 0  ;;  %vm859_vm12 = vcmp.eq.s32.totalorder %v3128_v27, 2 }
 0x10e   : > { %v932_v11 = vclz %v2041_v21  ;;  %v950_v36 = vsub.s32 4, %v926_v29  ;;  %v1014_v22 = vsel %vm1002_vm3, %v996_v17, %v1013_v12  ;;  %v1079_v7 = vand.u32 8388607, %v1072_v25 }
 0x10f   : > { %v3190_v48 = vmul.u32.u64.low %v1016_v8, %v1011_v3  ;;  %v3191_v18 = vmul.u32.u64.high %v1016_v8, %v1011_v3, %v3190_v48  ;;  %v1007_v6 = vsel %vm1001_vm5, %v1004_v20, %v1006_v60  ;;  %v1015_v14 = vsel %vm1001_vm5, %v1012_v38, %v1014_v22 }
 0x110   : > { %v2241_v16 = vpop.eup %2240  ;;  %v2042_v41 = vadd.s32 4294967294, %v932_v11  ;;  %v2048_v61 = vadd.s32 4294967169, %v1076_v43  ;;  %v920_v2 = vadd.s32 %v3109_v58, %v3115_v62  ;;  %v951_v0 = vsel %vm866_vm2, %v950_v36, %v926_v29 }
 0x111   : > { %v2243_v42 = vpop.eup %2242  ;;  %v860_v47 = vxor.u32 2147483648, %v2241_v16  ;;  %v3202_v5 = vmul.u32.u64.low %v1016_v8, %v1015_v14  ;;  %v3203_v10 = vmul.u32.u64.high %v1016_v8, %v1015_v14, %v3202_v5  ;;  %v1023_v44 = vmul.u32 %v1016_v8, %v1007_v6 }
 0x112   : > { %v857_v63 = vxor.u32 2147483648, %v2243_v42  ;;  %vm2043_vm10 = vcmp.lt.s32.totalorder %v2042_v41, 0  ;;  %v1082_v13 = vadd.s32 1, %v2048_v61  ;;  %v1026_v33 = vadd.s32 1, %v3191_v18 }
 0x113   : > { %v861_v37 = vsel %vm859_vm12, %v860_v47, %v2243_v42  ;;  %v935_v31 = vsel %vm2043_vm10, 0, %v2042_v41  ;;  %v953_v29 = vsel %vm3171_vm8, 0, %v951_v0  ;;  %vm1025_vm11 = vc.u32 %v3203_v10, %v3190_v48 }
 0x114   : > { %v858_v58 = vsel %vm856_vm9, %v2241_v16, %v857_v63  ;;  %v936_v62 = vsub.s32 32, %v935_v31  ;;  %v937_v19 = vshll.u32 %v3155_v35, %v935_v31  ;;  %v940_v17 = vsub.s32 4294967266, %v935_v31 }
 0x115   : > { %v862_v59 = vsel %vm855_vm4, %v858_v58, %v861_v37  ;;  %vm1083_vm13 = vcmp.gt.s32.totalorder %v1082_v13, 0  ;;  %v1027_v9 = vsel %vm1025_vm11, %v1026_v33, %v3191_v18  ;;  %v957_v4 = vadd.s32 3, %v953_v29 }
 0x116   : > { %v863_v8 = vsel %vm852_vm7, nan, %v862_v59  ;;  %v938_v15 = vshrl.u32 %v920_v2, %v936_v62  ;;  %v941_v34 = vadd.s32 127, %v940_v17  ;;  %v1028_v1 = vadd.s32 %v1027_v9, %v1023_v44 }
 0x117   : > { %v1084_v35 = vsel %vm1083_vm13, %v1082_v13, 0  ;;  %1909 = vst [vmem:[%s2885_s3 + $0x28] sm:$0xff] %v863_v8  ;;  %v1080_v60 = vor.u32 8388608, %v1079_v7  ;;  %v1179_v11 = vand.u32 2139095040, %v2577_v52  ;;  %v3232_v5 = vand.u32 3, %v957_v4 }
 0x118   : > { %v939_v21 = vor.u32 %v938_v15, %v937_v19  ;;  %v942_v27 = vshll.u32 %v941_v34, 23  ;;  %v1086_v20 = vand.u32 31, %v1084_v35  ;;  %v1029_v43 = vadd.s32 536870912, %v1028_v1 }
 0x119   : > { %v1085_v36 = vshrl.u32 %v1084_v35, 5  ;;  %v3237_v37 = vshll.u32 %v1080_v60, 8  ;;  %vm970_vm14 = vcmp.lt.s32.totalorder %v2575_v51, 0  ;;  %v1180_v17 = vshrl.u32 %v1179_v11, 23 }
 0x11a   : > { %v943_v3 = vor.u32 4788187, %v942_v27  ;;  %v946_v38 = vcvt.s32.f32 %v939_v21  ;;  %v1087_v12 = vsub.s32 32, %v1086_v20  ;;  %v1030_v49 = vshrl.u32 %v1029_v43, 30 }
 0x11b   : > { %v1089_v22 = vshll.u32 %v2414_v24, %v1086_v20  ;;  %v1092_v18 = vshll.u32 %v2415_v26, %v1086_v20  ;;  %v1098_v14 = vshll.u32 %v2417_v30, %v1086_v20  ;;  %v1095_v7 = vshll.u32 %v2416_v28, %v1086_v20 }
 0x11c   : > { %v944_v16 = vand.u32 2147483647, %v943_v3  ;;  %v1090_v41 = vshrl.u32 %v2415_v26, %v1087_v12  ;;  %v1093_v6 = vshrl.u32 %v2416_v28, %v1087_v12  ;;  %v1031_v61 = vshll.u32 %v1030_v49, 30 }
 0x11d   : > { %v1096_v42 = vshrl.u32 %v2417_v30, %v1087_v12  ;;  %v1099_v47 = vshrl.u32 %v2418_v32, %v1087_v12  ;;  %v1101_v13 = vshll.u32 %v2418_v32, %v1086_v20  ;;  %v1102_v58 = vshrl.u32 %v2419_v40, %v1087_v12 }
 0x11e   : > { %v947_v2 = vmul.f32 %v946_v38, %v944_v16  ;;  %v3234_v63 = vsub.s32 %v1028_v1, %v1031_v61  ;;  %v1091_v0 = vor.u32 %v1090_v41, %v1089_v22  ;;  %v1094_v44 = vor.u32 %v1093_v6, %v1092_v18 }
 0x11f   : > { %v1100_v33 = vor.u32 %v1099_v47, %v1098_v14  ;;  %v1097_v19 = vor.u32 %v1096_v42, %v1095_v7  ;;  %vm1104_vm15 = vcmp.lt.s32.totalorder %v1085_v36, 1  ;;  %v1088_v29 = vshrl.u32 %v2414_v24, %v1087_v12 }
 0x120   : > { %v948_v31 = vxor.u32 2147483648, %v947_v2  ;;  %v1034_v62 = vsub.s32 0, %v3234_v63  ;;  %vm1106_vm0 = vcmp.lt.s32.totalorder %v1085_v36, 3  ;;  %vm1107_vm1 = vcmp.lt.s32.totalorder %v1085_v36, 4 }
 0x121   : > { %v1103_v34 = vor.u32 %v1102_v58, %v1101_v13  ;;  %v1109_v9 = vsel %vm1107_vm1, %v1097_v19, 2102212464  ;;  %vm3252_vm3 = vcmp.le.f32.partialorder %v968_v23, 0.7853982  ;;  %v1112_v35 = vsel %vm1104_vm15, %v1091_v0, %v1094_v44 }
 0x122   : > { %v949_v59 = vsel %vm866_vm2, %v948_v31, %v947_v2  ;;  %v2045_v15 = vmin.u32 %v1034_v62, %v3234_v63  ;;  %vm1105_vm2 = vcmp.lt.s32.totalorder %v1085_v36, 2  ;;  %v1113_v21 = vsel %vm1107_vm1, %v1100_v33, 920167782 }
 0x123   : > { %v952_v8 = vsel %vm3171_vm8, %v2573_v50, %v949_v59  ;;  %v1054_v27 = vsub.s32 4, %v1030_v49  ;;  %v1176_v20 = vand.u32 2147483647, %v2577_v52  ;;  %v1108_v4 = vsel %vm1104_vm15, %v1088_v29, %v1091_v0 }
 0x124   : > { %2244 = vcosq.f32 %v952_v8  ;;  %v1036_v39 = vclz %v2045_v15  ;;  %v1110_v43 = vsel %vm1106_vm0, %v1094_v44, %v1109_v9  ;;  %v1114_v60 = vsel %vm1106_vm0, %v1097_v19, %v1113_v21 }
 0x125   : > { %2246 = vsinq.f32 %v952_v8  ;;  %v1116_v23 = vsel %vm1104_vm15, %v1094_v44, %v1097_v19  ;;  %v1024_v3 = vadd.s32 %v3190_v48, %v3203_v10  ;;  %v1115_v12 = vsel %vm1105_vm2, %v1112_v35, %v1114_v60 }
 0x126   : > { %v2046_v38 = vadd.s32 4294967294, %v1036_v39  ;;  %v1117_v11 = vsel %vm1107_vm1, %v1103_v34, 1326507024  ;;  %v3269_v18 = vmul.u32.u64.low %v3237_v37, %v1115_v12  ;;  %v3270_v16 = vmul.u32.u64.high %v3237_v37, %v1115_v12, %v3269_v18 }
 0x127   : > { %v1118_v22 = vsel %vm1106_vm0, %v1100_v33, %v1117_v11  ;;  %v2052_v41 = vadd.s32 4294967169, %v1180_v17  ;;  %vm956_vm4 = vweird.f32 %v2573_v50  ;;  %v1055_v6 = vsel %vm970_vm14, %v1054_v27, %v1030_v49 }
 0x128   : > { %vm2047_vm5 = vcmp.lt.s32.totalorder %v2046_v38, 0  ;;  %v1111_v48 = vsel %vm1105_vm2, %v1108_v4, %v1110_v43  ;;  %v1119_v10 = vsel %vm1105_vm2, %v1116_v23, %v1118_v22  ;;  %vm959_vm6 = vcmp.lt.s32.totalorder %v3232_v5, 2 }
 0x129   : > { %v1039_v14 = vsel %vm2047_vm5, 0, %v2046_v38  ;;  %v3279_v61 = vmul.u32.u64.low %v3237_v37, %v1119_v10  ;;  %v3280_v7 = vmul.u32.u64.high %v3237_v37, %v1119_v10, %v3279_v61  ;;  %v1186_v42 = vadd.s32 1, %v2052_v41 }
 0x12a   : > { %v1040_v47 = vsub.s32 32, %v1039_v14  ;;  %v1041_v2 = vshll.u32 %v3234_v63, %v1039_v14  ;;  %v1044_v0 = vsub.s32 4294967266, %v1039_v14  ;;  %v1127_v13 = vmul.u32 %v3237_v37, %v1111_v48 }
 0x12b   : > { %v1130_v49 = vadd.s32 1, %v3270_v16  ;;  %v1183_v36 = vand.u32 8388607, %v1176_v20  ;;  %vm1187_vm7 = vcmp.gt.s32.totalorder %v1186_v42, 0  ;;  %v1057_v33 = vsel %vm3252_vm3, 0, %v1055_v6 }
 0x12c   : > { %v1042_v31 = vshrl.u32 %v1024_v3, %v1040_v47  ;;  %v1045_v44 = vadd.s32 127, %v1044_v0  ;;  %v1188_v58 = vsel %vm1187_vm7, %v1186_v42, 0  ;;  %vm960_vm8 = vcmp.eq.s32.totalorder %v3232_v5, 0 }
 0x12d   : > { %vm963_vm9 = vcmp.eq.s32.totalorder %v3232_v5, 2  ;;  %vm1129_vm12 = vc.u32 %v3280_v7, %v3269_v18  ;;  %v1190_v63 = vand.u32 31, %v1188_v58  ;;  %v1061_v15 = vadd.s32 3, %v1057_v33 }
 0x12e   : > { %v2245_v62 = vpop.eup %2244  ;;  %v1043_v17 = vor.u32 %v1042_v31, %v1041_v2  ;;  %v1046_v59 = vshll.u32 %v1045_v44, 23  ;;  %v1131_v29 = vsel %vm1129_vm12, %v1130_v49, %v3270_v16  ;;  %v1184_v27 = vor.u32 8388608, %v1183_v36 }
 0x12f   : > { %v2247_v37 = vpop.eup %2246  ;;  %v964_v19 = vxor.u32 2147483648, %v2245_v62  ;;  %v1132_v34 = vadd.s32 %v1131_v29, %v1127_v13  ;;  %v1191_v9 = vsub.s32 32, %v1190_v63  ;;  %v1193_v60 = vshll.u32 %v2414_v24, %v1190_v63 }
 0x130   : > { %v961_v8 = vxor.u32 2147483648, %v2247_v37  ;;  %v1047_v21 = vor.u32 4788187, %v1046_v59  ;;  %v1050_v39 = vcvt.s32.f32 %v1043_v17  ;;  %v1196_v23 = vshll.u32 %v2415_v26, %v1190_v63 }
 0x131   : > { %v965_v35 = vsel %vm963_vm9, %v964_v19, %v2247_v37  ;;  %v1133_v43 = vadd.s32 536870912, %v1132_v34  ;;  %v1194_v12 = vshrl.u32 %v2415_v26, %v1191_v9  ;;  %v1197_v11 = vshrl.u32 %v2416_v28, %v1191_v9 }
 0x132   : > { %v962_v4 = vsel %vm960_vm8, %v2245_v62, %v961_v8  ;;  %v1048_v38 = vand.u32 2147483647, %v1047_v21  ;;  %v1199_v41 = vshll.u32 %v2416_v28, %v1190_v63  ;;  %v1200_v6 = vshrl.u32 %v2417_v30, %v1191_v9 }
 0x133   : > { %v966_v3 = vsel %vm959_vm6, %v962_v4, %v965_v35  ;;  %v1134_v16 = vshrl.u32 %v1133_v43, 30  ;;  %v1189_v10 = vshrl.u32 %v1188_v58, 5  ;;  %v1202_v14 = vshll.u32 %v2417_v30, %v1190_v63 }
 0x134   : > { %v967_v22 = vsel %vm956_vm4, nan, %v966_v3  ;;  %v1051_v48 = vmul.f32 %v1050_v39, %v1048_v38  ;;  %v1203_v5 = vshrl.u32 %v2418_v32, %v1191_v9  ;;  %v1205_v42 = vshll.u32 %v2418_v32, %v1190_v63 }
 0x135   : > { %1910 = vst [vmem:[%s2885_s3 + $0x30] sm:$0xff] %v967_v22  ;;  %v1135_v61 = vshll.u32 %v1134_v16, 30  ;;  %v3311_v47 = vshll.u32 %v1184_v27, 8  ;;  %v1283_v50 = vand.u32 2139095040, %v2579_v53  ;;  %v1192_v0 = vshrl.u32 %v2414_v24, %v1191_v9 }
 0x136   : > { %v1052_v2 = vxor.u32 2147483648, %v1051_v48  ;;  %v1204_v13 = vor.u32 %v1203_v5, %v1202_v14  ;;  %v1206_v49 = vshrl.u32 %v2419_v40, %v1191_v9  ;;  %v1195_v31 = vor.u32 %v1194_v12, %v1193_v60 }
 0x137   : > { %v3316_v36 = vsub.s32 %v1132_v34, %v1135_v61  ;;  %v1198_v44 = vor.u32 %v1197_v11, %v1196_v23  ;;  %v1201_v33 = vor.u32 %v1200_v6, %v1199_v41  ;;  %vm1208_vm10 = vcmp.lt.s32.totalorder %v1189_v10, 1 }
 0x138   : > { %v1053_v58 = vsel %vm970_vm14, %v1052_v2, %v1051_v48  ;;  %v1207_v62 = vor.u32 %v1206_v49, %v1205_v42  ;;  %vm1211_vm11 = vcmp.lt.s32.totalorder %v1189_v10, 4  ;;  %vm1209_vm13 = vcmp.lt.s32.totalorder %v1189_v10, 2 }
 0x139   : > { %v1056_v63 = vsel %vm3252_vm3, %v2575_v51, %v1053_v58  ;;  %v1138_v37 = vsub.s32 0, %v3316_v36  ;;  %vm1210_vm15 = vcmp.lt.s32.totalorder %v1189_v10, 3  ;;  %v1212_v19 = vsel %vm1208_vm10, %v1192_v0, %v1195_v31 }
 0x13a   : > { %2248 = vcosq.f32 %v1056_v63  ;;  %v1213_v17 = vsel %vm1211_vm11, %v1201_v33, 2102212464  ;;  %v1217_v59 = vsel %vm1211_vm11, %v1204_v13, 920167782  ;;  %v1216_v34 = vsel %vm1208_vm10, %v1195_v31, %v1198_v44 }
 0x13b   : > { %2250 = vsinq.f32 %v1056_v63  ;;  %v2049_v29 = vmin.u32 %v1138_v37, %v3316_v36  ;;  %v1214_v8 = vsel %vm1210_vm15, %v1198_v44, %v1213_v17  ;;  %vm1074_vm14 = vcmp.lt.s32.totalorder %v2563_v45, 0 }
 0x13c   : > { %v1218_v1 = vsel %vm1210_vm15, %v1201_v33, %v1217_v59  ;;  %v1220_v9 = vsel %vm1208_vm10, %v1198_v44, %v1201_v33  ;;  %v1221_v35 = vsel %vm1211_vm11, %v1207_v62, 1326507024  ;;  %v1062_v21 = vand.u32 3, %v1061_v15 }
 0x13d   : > { %vm3336_vm0 = vcmp.le.f32.partialorder %v1072_v25, 0.7853982  ;;  %v1140_v27 = vclz %v2049_v29  ;;  %v1158_v4 = vsub.s32 4, %v1134_v16  ;;  %v1215_v43 = vsel %vm1209_vm13, %v1212_v19, %v1214_v8 }
 0x13e   : > { %v1219_v60 = vsel %vm1209_vm13, %v1216_v34, %v1218_v1  ;;  %v1222_v23 = vsel %vm1210_vm15, %v1204_v13, %v1221_v35  ;;  %v1284_v3 = vshrl.u32 %v1283_v50, 23  ;;  %v1280_v41 = vand.u32 2147483647, %v2579_v53 }
 0x13f   : > { %v2050_v38 = vadd.s32 4294967294, %v1140_v27  ;;  %v1223_v12 = vsel %vm1209_vm13, %v1220_v9, %v1222_v23  ;;  %v3345_v15 = vmul.u32.u64.low %v3311_v47, %v1219_v60  ;;  %v3346_v11 = vmul.u32.u64.high %v3311_v47, %v1219_v60, %v3345_v15 }
 0x140   : > { %v3350_v25 = vmul.u32.u64.low %v3311_v47, %v1223_v12  ;;  %v3351_v22 = vmul.u32.u64.high %v3311_v47, %v1223_v12, %v3350_v25  ;;  %v2056_v6 = vadd.s32 4294967169, %v1284_v3  ;;  %vm1064_vm1 = vcmp.eq.s32.totalorder %v1062_v21, 0 }
 0x141   : > { %v1128_v48 = vadd.s32 %v3269_v18, %v3280_v7  ;;  %vm2051_vm3 = vcmp.lt.s32.totalorder %v2050_v38, 0  ;;  %v1159_v10 = vsel %vm1074_vm14, %v1158_v4, %v1134_v16  ;;  %vm1067_vm2 = vcmp.eq.s32.totalorder %v1062_v21, 2 }
 0x142   : > { %v1143_v14 = vsel %vm2051_vm3, 0, %v2050_v38  ;;  %v1231_v5 = vmul.u32 %v3311_v47, %v1215_v43  ;;  %v1290_v61 = vadd.s32 1, %v2056_v6  ;;  %v1234_v0 = vadd.s32 1, %v3346_v11 }
 0x143   : > { %v1144_v42 = vsub.s32 32, %v1143_v14  ;;  %v1145_v50 = vshll.u32 %v3316_v36, %v1143_v14  ;;  %v1148_v2 = vsub.s32 4294967266, %v1143_v14  ;;  %v1161_v49 = vsel %vm3336_vm0, 0, %v1159_v10 }
 0x144   : > { %v2249_v13 = vpop.eup %2248  ;;  %vm1233_vm4 = vc.u32 %v3351_v22, %v3345_v15  ;;  %v1287_v18 = vand.u32 8388607, %v1280_v41  ;;  %vm1291_vm5 = vcmp.gt.s32.totalorder %v1290_v61, 0  ;;  %vm1063_vm6 = vcmp.lt.s32.totalorder %v1062_v21, 2 }
 0x145   : > { %v2251_v7 = vpop.eup %2250  ;;  %v1068_v16 = vxor.u32 2147483648, %v2249_v13  ;;  %v1146_v47 = vshrl.u32 %v1128_v48, %v1144_v42  ;;  %v1149_v31 = vadd.s32 127, %v1148_v2  ;;  %v1235_v36 = vsel %vm1233_vm4, %v1234_v0, %v3346_v11 }
 0x146   : > { %v1065_v44 = vxor.u32 2147483648, %v2251_v7  ;;  %v1236_v33 = vadd.s32 %v1235_v36, %v1231_v5  ;;  %v1292_v58 = vsel %vm1291_vm5, %v1290_v61, 0  ;;  %vm1060_vm7 = vweird.f32 %v2575_v51 }
 0x147   : > { %v1069_v62 = vsel %vm1067_vm2, %v1068_v16, %v2251_v7  ;;  %v1147_v63 = vor.u32 %v1146_v47, %v1145_v50  ;;  %v1150_v37 = vshll.u32 %v1149_v31, 23  ;;  %v1165_v17 = vadd.s32 3, %v1161_v49 }
 0x148   : > { %v1066_v19 = vsel %vm1064_vm1, %v2249_v13, %v1065_v44  ;;  %v1237_v59 = vadd.s32 536870912, %v1236_v33  ;;  %v1294_v29 = vand.u32 31, %v1292_v58  ;;  %v1288_v9 = vor.u32 8388608, %v1287_v18 }
 0x149   : > { %v1070_v8 = vsel %vm1063_vm6, %v1066_v19, %v1069_v62  ;;  %v1151_v34 = vor.u32 4788187, %v1150_v37  ;;  %v1154_v1 = vcvt.s32.f32 %v1147_v63  ;;  %v1387_v43 = vand.u32 2139095040, %v2581_v54 }
 0x14a   : > { %v1071_v35 = vsel %vm1060_vm7, nan, %v1070_v8  ;;  %v1238_v27 = vshrl.u32 %v1237_v59, 30  ;;  %v1295_v4 = vsub.s32 32, %v1294_v29  ;;  %v1293_v60 = vshrl.u32 %v1292_v58, 5 }
 0x14b   : > { %v1152_v51 = vand.u32 2147483647, %v1151_v34  ;;  %v1297_v23 = vshll.u32 %v2414_v24, %v1294_v29  ;;  %v1300_v21 = vshll.u32 %v2415_v26, %v1294_v29  ;;  %1911 = vst [vmem:[%s2885_s3 + $0x38] sm:$0xff] %v1071_v35  ;;  %v1303_v12 = vshll.u32 %v2416_v28, %v1294_v29 }
 0x14c   : > { %v1239_v3 = vshll.u32 %v1238_v27, 30  ;;  %v1298_v38 = vshrl.u32 %v2415_v26, %v1295_v4  ;;  %v1306_v11 = vshll.u32 %v2417_v30, %v1294_v29  ;;  %v1301_v6 = vshrl.u32 %v2416_v28, %v1295_v4 }
 0x14d   : > { %v1155_v25 = vmul.f32 %v1154_v1, %v1152_v51  ;;  %v1304_v48 = vshrl.u32 %v2417_v30, %v1295_v4  ;;  %v1307_v10 = vshrl.u32 %v2418_v32, %v1295_v4  ;;  %v3381_v14 = vand.u32 3, %v1165_v17 }
 0x14e   : > { %v3383_v5 = vsub.s32 %v1236_v33, %v1239_v3  ;;  %v1309_v61 = vshll.u32 %v2418_v32, %v1294_v29  ;;  %v1296_v50 = vshrl.u32 %v2414_v24, %v1295_v4  ;;  %v3387_v2 = vshll.u32 %v1288_v9, 8 }
 0x14f   : > { %v1156_v42 = vxor.u32 2147483648, %v1155_v25  ;;  %v1388_v0 = vshrl.u32 %v1387_v43, 23  ;;  %vm1178_vm8 = vcmp.lt.s32.totalorder %v2577_v52, 0  ;;  %v1299_v49 = vor.u32 %v1298_v38, %v1297_v23 }
 0x150   : > { %v1242_v13 = vsub.s32 0, %v3383_v5  ;;  %v1302_v18 = vor.u32 %v1301_v6, %v1300_v21  ;;  %v1310_v7 = vshrl.u32 %v2419_v40, %v1295_v4  ;;  %v1305_v47 = vor.u32 %v1304_v48, %v1303_v12 }
 0x151   : > { %v1157_v16 = vsel %vm1074_vm14, %v1156_v42, %v1155_v25  ;;  %v1308_v31 = vor.u32 %v1307_v10, %v1306_v11  ;;  %vm1312_vm9 = vcmp.lt.s32.totalorder %v1293_v60, 1  ;;  %vm1315_vm12 = vcmp.lt.s32.totalorder %v1293_v60, 4 }
 0x152   : > { %v1160_v36 = vsel %vm3336_vm0, %v2563_v45, %v1157_v16  ;;  %v2053_v44 = vmin.u32 %v1242_v13, %v3383_v5  ;;  %v1311_v33 = vor.u32 %v1310_v7, %v1309_v61  ;;  %vm1313_vm10 = vcmp.lt.s32.totalorder %v1293_v60, 2 }
 0x153   : > { %2252 = vcosq.f32 %v1160_v36  ;;  %vm1314_vm11 = vcmp.lt.s32.totalorder %v1293_v60, 3  ;;  %v1317_v58 = vsel %vm1315_vm12, %v1305_v47, 2102212464  ;;  %v1316_v63 = vsel %vm1312_vm9, %v1296_v50, %v1299_v49 }
 0x154   : > { %2254 = vsinq.f32 %v1160_v36  ;;  %v1244_v62 = vclz %v2053_v44  ;;  %v1320_v37 = vsel %vm1312_vm9, %v1299_v49, %v1302_v18  ;;  %v1262_v19 = vsub.s32 4, %v1238_v27 }
 0x155   : > { %v1318_v17 = vsel %vm1314_vm11, %v1302_v18, %v1317_v58  ;;  %v1321_v39 = vsel %vm1315_vm12, %v1308_v31, 920167782  ;;  %v1324_v59 = vsel %vm1312_vm9, %v1302_v18, %v1305_v47  ;;  %v1232_v29 = vadd.s32 %v3345_v15, %v3351_v22 }
 0x156   : > { %v2054_v8 = vadd.s32 4294967294, %v1244_v62  ;;  %v1322_v34 = vsel %vm1314_vm11, %v1305_v47, %v1321_v39  ;;  %v1325_v1 = vsel %vm1315_vm12, %v1311_v33, 1326507024  ;;  %v1319_v9 = vsel %vm1313_vm10, %v1316_v63, %v1318_v17 }
 0x157   : > { %v1323_v35 = vsel %vm1313_vm10, %v1320_v37, %v1322_v34  ;;  %v1326_v4 = vsel %vm1314_vm11, %v1308_v31, %v1325_v1  ;;  %v2060_v43 = vadd.s32 4294967169, %v1388_v0  ;;  %v1263_v22 = vsel %vm1178_vm8, %v1262_v19, %v1238_v27 }
 0x158   : > { %vm2055_vm13 = vcmp.lt.s32.totalorder %v2054_v8, 0  ;;  %v1327_v51 = vsel %vm1313_vm10, %v1324_v59, %v1326_v4  ;;  %v3413_v23 = vmul.u32.u64.low %v3387_v2, %v1323_v35  ;;  %v3414_v21 = vmul.u32.u64.high %v3387_v2, %v1323_v35, %v3413_v23 }
 0x159   : > { %v1247_v15 = vsel %vm2055_vm13, 0, %v2054_v8  ;;  %v3420_v3 = vmul.u32.u64.low %v3387_v2, %v1327_v51  ;;  %v3421_v38 = vmul.u32.u64.high %v3387_v2, %v1327_v51, %v3420_v3  ;;  %v1394_v6 = vadd.s32 1, %v2060_v43 }
 0x15a   : > { %v1248_v12 = vsub.s32 32, %v1247_v15  ;;  %v1249_v11 = vshll.u32 %v3383_v5, %v1247_v15  ;;  %v1252_v25 = vsub.s32 4294967266, %v1247_v15  ;;  %vm1168_vm15 = vcmp.eq.s32.totalorder %v3381_v14, 0 }
 0x15b   : > { %vm1171_vm14 = vcmp.eq.s32.totalorder %v3381_v14, 2  ;;  %vm3428_vm0 = vcmp.le.f32.partialorder %v1176_v20, 0.7853982  ;;  %v1335_v27 = vmul.u32 %v3387_v2, %v1319_v9  ;;  %v1338_v61 = vadd.s32 1, %v3414_v21 }
 0x15c   : > { %v1250_v48 = vshrl.u32 %v1232_v29, %v1248_v12  ;;  %v1253_v10 = vadd.s32 127, %v1252_v25  ;;  %vm1395_vm1 = vcmp.gt.s32.totalorder %v1394_v6, 0  ;;  %v1265_v42 = vsel %vm3428_vm0, 0, %v1263_v22 }
 0x15d   : > { %v2253_v5 = vpop.eup %2252  ;;  %vm1337_vm3 = vc.u32 %v3421_v38, %v3413_v23  ;;  %v1384_v50 = vand.u32 2147483647, %v2581_v54  ;;  %v1396_v20 = vsel %vm1395_vm1, %v1394_v6, 0  ;;  %vm1167_vm2 = vcmp.lt.s32.totalorder %v3381_v14, 2 }
 0x15e   : > { %v2255_v0 = vpop.eup %2254  ;;  %v1172_v13 = vxor.u32 2147483648, %v2253_v5  ;;  %v1251_v49 = vor.u32 %v1250_v48, %v1249_v11  ;;  %v1254_v18 = vshll.u32 %v1253_v10, 23  ;;  %v1339_v2 = vsel %vm1337_vm3, %v1338_v61, %v3414_v21 }
 0x15f   : > { %v1169_v7 = vxor.u32 2147483648, %v2255_v0  ;;  %v1340_v16 = vadd.s32 %v1339_v2, %v1335_v27  ;;  %v1398_v47 = vand.u32 31, %v1396_v20  ;;  %vm1164_vm4 = vweird.f32 %v2563_v45 }
 0x160   : > { %v1173_v31 = vsel %vm1171_vm14, %v1172_v13, %v2255_v0  ;;  %v1255_v36 = vor.u32 4788187, %v1254_v18  ;;  %v1258_v44 = vcvt.s32.f32 %v1251_v49  ;;  %v1269_v58 = vadd.s32 3, %v1265_v42 }
 0x161   : > { %v1170_v33 = vsel %vm1168_vm15, %v2253_v5, %v1169_v7  ;;  %v1341_v62 = vadd.s32 536870912, %v1340_v16  ;;  %v1399_v63 = vsub.s32 32, %v1398_v47  ;;  %v1391_v17 = vand.u32 8388607, %v1384_v50 }
 0x162   : > { %v1174_v37 = vsel %vm1167_vm2, %v1170_v33, %v1173_v31  ;;  %v1256_v19 = vand.u32 2147483647, %v1255_v36  ;;  %v3448_v39 = vshrl.u32 %v1396_v20, 5  ;;  %v1401_v29 = vshll.u32 %v2414_v24, %v1398_v47 }
 0x163   : > { %v1175_v45 = vsel %vm1164_vm4, nan, %v1174_v37  ;;  %v1342_v59 = vshrl.u32 %v1341_v62, 30  ;;  %v1404_v8 = vshll.u32 %v2415_v26, %v1398_v47  ;;  %v1402_v14 = vshrl.u32 %v2415_v26, %v1399_v63 }
 0x164   : > { %v1259_v34 = vmul.f32 %v1258_v44, %v1256_v19  ;;  %v1405_v1 = vshrl.u32 %v2416_v28, %v1399_v63  ;;  %v1410_v9 = vshll.u32 %v2417_v30, %v1398_v47  ;;  %1912 = vst [vmem:[%s2885_s3 + $0x40] sm:$0xff] %v1175_v45  ;;  %v1407_v4 = vshll.u32 %v2416_v28, %v1398_v47 }
 0x165   : > { %v1343_v35 = vshll.u32 %v1342_v59, 30  ;;  %v1408_v43 = vshrl.u32 %v2417_v30, %v1399_v63  ;;  %v1411_v51 = vshrl.u32 %v2418_v32, %v1399_v63  ;;  %v3459_v15 = vand.u32 3, %v1269_v58 }
 0x166   : > { %v1260_v21 = vxor.u32 2147483648, %v1259_v34  ;;  %vm1282_vm5 = vcmp.lt.s32.totalorder %v2579_v53, 0  ;;  %v1413_v22 = vshll.u32 %v2418_v32, %v1398_v47  ;;  %v1392_v12 = vor.u32 8388608, %v1391_v17 }
 0x167   : > { %v3463_v3 = vsub.s32 %v1340_v16, %v1343_v35  ;;  %v1400_v11 = vshrl.u32 %v2414_v24, %v1399_v63  ;;  %v1414_v25 = vshrl.u32 %v2419_v40, %v1399_v63  ;;  %v1403_v27 = vor.u32 %v1402_v14, %v1401_v29 }
 0x168   : > { %v1261_v6 = vsel %vm1178_vm8, %v1260_v21, %v1259_v34  ;;  %v1406_v48 = vor.u32 %v1405_v1, %v1404_v8  ;;  %v1412_v10 = vor.u32 %v1411_v51, %v1410_v9  ;;  %vm3474_vm6 = vcmp.le.f32.partialorder %v1280_v41, 0.7853982 }
 0x169   : > { %v1264_v61 = vsel %vm3428_vm0, %v2577_v52, %v1261_v6  ;;  %v1346_v42 = vsub.s32 0, %v3463_v3  ;;  %v1409_v20 = vor.u32 %v1408_v43, %v1407_v4  ;;  %vm1416_vm7 = vcmp.lt.s32.totalorder %v3448_v39, 1 }
 0x16a   : > { %2256 = vcosq.f32 %v1264_v61  ;;  %v1366_v0 = vsub.s32 4, %v1342_v59  ;;  %v1415_v13 = vor.u32 %v1414_v25, %v1413_v22  ;;  %vm1419_vm8 = vcmp.lt.s32.totalorder %v3448_v39, 4 }
 0x16b   : > { %2258 = vsinq.f32 %v1264_v61  ;;  %v2057_v60 = vmin.u32 %v1346_v42, %v3463_v3  ;;  %vm1418_vm9 = vcmp.lt.s32.totalorder %v3448_v39, 3  ;;  %v1421_v41 = vsel %vm1419_vm8, %v1409_v20, 2102212464 }
 0x16c   : > { %vm1417_vm12 = vcmp.lt.s32.totalorder %v3448_v39, 2  ;;  %v1424_v49 = vsel %vm1416_vm7, %v1403_v27, %v1406_v48  ;;  %v1425_v18 = vsel %vm1419_vm8, %v1412_v10, 920167782  ;;  %v1432_v2 = vshll.u32 %v1392_v12, 8 }
 0x16d   : > { %v1336_v7 = vadd.s32 %v3413_v23, %v3421_v38  ;;  %v1348_v16 = vclz %v2057_v60  ;;  %v1420_v47 = vsel %vm1416_vm7, %v1400_v11, %v1403_v27  ;;  %v1428_v31 = vsel %vm1416_vm7, %v1406_v48, %v1409_v20 }
 0x16e   : > { %vm1271_vm10 = vcmp.lt.s32.totalorder %v3459_v15, 2  ;;  %v1422_v36 = vsel %vm1418_vm9, %v1406_v48, %v1421_v41  ;;  %v1426_v44 = vsel %vm1418_vm9, %v1409_v20, %v1425_v18  ;;  %v1429_v33 = vsel %vm1419_vm8, %v1415_v13, 1326507024 }
 0x16f   : > { %v1491_v23 = vand.u32 2139095040, %v2565_v46  ;;  %vm1268_vm11 = vweird.f32 %v2577_v52  ;;  %v2058_v38 = vadd.s32 4294967294, %v1348_v16  ;;  %v1367_v58 = vsel %vm1282_vm5, %v1366_v0, %v1342_v59 }
 0x170   : > { %v1427_v62 = vsel %vm1417_vm12, %v1424_v49, %v1426_v44  ;;  %v1430_v63 = vsel %vm1418_vm9, %v1412_v10, %v1429_v33  ;;  %v1423_v29 = vsel %vm1417_vm12, %v1420_v47, %v1422_v36  ;;  %v1369_v14 = vsel %vm3474_vm6, 0, %v1367_v58 }
 0x171   : > { %v1431_v37 = vsel %vm1417_vm12, %v1428_v31, %v1430_v63  ;;  %v3513_v19 = vmul.u32.u64.low %v1432_v2, %v1427_v62  ;;  %v3514_v17 = vmul.u32.u64.high %v1432_v2, %v1427_v62, %v3513_v19  ;;  %v1492_v45 = vshrl.u32 %v1491_v23, 23 }
 0x172   : > { %vm2059_vm13 = vcmp.lt.s32.totalorder %v2058_v38, 0  ;;  %v3519_v8 = vmul.u32.u64.low %v1432_v2, %v1431_v37  ;;  %v3520_v59 = vmul.u32.u64.high %v1432_v2, %v1431_v37, %v3519_v8  ;;  %v1488_v1 = vand.u32 2147483647, %v2565_v46 }
 0x173   : > { %v1351_v34 = vsel %vm2059_vm13, 0, %v2058_v38  ;;  %v2064_v9 = vadd.s32 4294967169, %v1492_v45  ;;  %vm1272_vm15 = vcmp.eq.s32.totalorder %v3459_v15, 0  ;;  %vm1275_vm14 = vcmp.eq.s32.totalorder %v3459_v15, 2 }
 0x174   : > { %v1352_v35 = vsub.s32 32, %v1351_v34  ;;  %v1353_v4 = vshll.u32 %v3463_v3, %v1351_v34  ;;  %v1356_v43 = vsub.s32 4294967266, %v1351_v34  ;;  %v2257_v51 = vpop.eup %2256  ;;  %v1439_v39 = vmul.u32 %v1432_v2, %v1423_v29 }
 0x175   : > { %v1442_v21 = vadd.s32 1, %v3514_v17  ;;  %v1498_v22 = vadd.s32 1, %v2064_v9  ;;  %v2259_v12 = vpop.eup %2258  ;;  %v1276_v11 = vxor.u32 2147483648, %v2257_v51  ;;  %v1373_v27 = vadd.s32 3, %v1369_v14 }
 0x176   : > { %v1354_v25 = vshrl.u32 %v1336_v7, %v1352_v35  ;;  %v1357_v6 = vadd.s32 127, %v1356_v43  ;;  %v1273_v48 = vxor.u32 2147483648, %v2259_v12  ;;  %vm1441_vm0 = vc.u32 %v3520_v59, %v3513_v19 }
 0x177   : > { %v1495_v3 = vand.u32 8388607, %v1488_v1  ;;  %vm1499_vm1 = vcmp.gt.s32.totalorder %v1498_v22, 0  ;;  %v1277_v10 = vsel %vm1275_vm14, %v1276_v11, %v2259_v12  ;;  %v1443_v20 = vsel %vm1441_vm0, %v1442_v21, %v3514_v17 }
 0x178   : > { %v1355_v61 = vor.u32 %v1354_v25, %v1353_v4  ;;  %v1358_v42 = vshll.u32 %v1357_v6, 23  ;;  %v1274_v0 = vsel %vm1272_vm15, %v2257_v51, %v1273_v48  ;;  %v1444_v13 = vadd.s32 %v1443_v20, %v1439_v39 }
 0x179   : > { %v1500_v60 = vsel %vm1499_vm1, %v1498_v22, 0  ;;  %v1278_v41 = vsel %vm1271_vm10, %v1274_v0, %v1277_v10  ;;  %v3540_v31 = vand.u32 3, %v1373_v27  ;;  %v1496_v36 = vor.u32 8388608, %v1495_v3 }
 0x17a   : > { %v1359_v49 = vor.u32 4788187, %v1358_v42  ;;  %v1362_v18 = vcvt.s32.f32 %v1355_v61  ;;  %v1279_v2 = vsel %vm1268_vm11, nan, %v1278_v41  ;;  %v1445_v7 = vadd.s32 536870912, %v1444_v13 }
 0x17b   : > { %v1502_v16 = vand.u32 31, %v1500_v60  ;;  %1913 = vst [vmem:[%s2885_s3 + $0x48] sm:$0xff] %v1279_v2  ;;  %v1501_v33 = vshrl.u32 %v1500_v60, 5  ;;  %v1595_v38 = vand.u32 2139095040, %v2583_v55  ;;  %vm1386_vm3 = vcmp.lt.s32.totalorder %v2581_v54, 0 }
 0x17c   : > { %v1360_v47 = vand.u32 2147483647, %v1359_v49  ;;  %v1446_v44 = vshrl.u32 %v1445_v7, 30  ;;  %vm3565_vm4 = vcmp.le.f32.partialorder %v1384_v50, 0.7853982  ;;  %v1536_v61 = vshll.u32 %v1496_v36, 8 }
 0x17d   : > { %v1503_v23 = vsub.s32 32, %v1502_v16  ;;  %v1505_v15 = vshll.u32 %v2414_v24, %v1502_v16  ;;  %v1508_v62 = vshll.u32 %v2415_v26, %v1502_v16  ;;  %v1511_v52 = vshll.u32 %v2416_v28, %v1502_v16 }
 0x17e   : > { %v1363_v58 = vmul.f32 %v1362_v18, %v1360_v47  ;;  %v1447_v63 = vshll.u32 %v1446_v44, 30  ;;  %v1514_v17 = vshll.u32 %v2417_v30, %v1502_v16  ;;  %v1517_v45 = vshll.u32 %v2418_v32, %v1502_v16 }
 0x17f   : > { %v1506_v37 = vshrl.u32 %v2415_v26, %v1503_v23  ;;  %v1509_v8 = vshrl.u32 %v2416_v28, %v1503_v23  ;;  %v1512_v34 = vshrl.u32 %v2417_v30, %v1503_v23  ;;  %v1515_v14 = vshrl.u32 %v2418_v32, %v1503_v23 }
 0x180   : > { %v1364_v29 = vxor.u32 2147483648, %v1363_v58  ;;  %v3554_v9 = vsub.s32 %v1444_v13, %v1447_v63  ;;  %v1518_v35 = vshrl.u32 %v2419_v40, %v1503_v23  ;;  %vm1520_vm2 = vcmp.lt.s32.totalorder %v1501_v33, 1 }
 0x181   : > { %v1596_v4 = vshrl.u32 %v1595_v38, 23  ;;  %v1504_v51 = vshrl.u32 %v2414_v24, %v1503_v23  ;;  %v1507_v39 = vor.u32 %v1506_v37, %v1505_v15  ;;  %v1510_v21 = vor.u32 %v1509_v8, %v1508_v62 }
 0x182   : > { %v1365_v43 = vsel %vm1282_vm5, %v1364_v29, %v1363_v58  ;;  %v1450_v11 = vsub.s32 0, %v3554_v9  ;;  %v1513_v25 = vor.u32 %v1512_v34, %v1511_v52  ;;  %v1516_v6 = vor.u32 %v1515_v14, %v1514_v17 }
 0x183   : > { %v1368_v22 = vsel %vm3474_vm6, %v2579_v53, %v1365_v43  ;;  %v1519_v27 = vor.u32 %v1518_v35, %v1517_v45  ;;  %vm1522_vm5 = vcmp.lt.s32.totalorder %v1501_v33, 3  ;;  %vm1523_vm7 = vcmp.lt.s32.totalorder %v1501_v33, 4 }
 0x184   : > { %2260 = vcosq.f32 %v1368_v22  ;;  %v2061_v48 = vmin.u32 %v1450_v11, %v3554_v9  ;;  %v1470_v3 = vsub.s32 4, %v1446_v44  ;;  %v1525_v5 = vsel %vm1523_vm7, %v1513_v25, 2102212464 }
 0x185   : > { %2262 = vsinq.f32 %v1368_v22  ;;  %vm1521_vm6 = vcmp.lt.s32.totalorder %v1501_v33, 2  ;;  %v1528_v10 = vsel %vm1520_vm2, %v1507_v39, %v1510_v21  ;;  %v1529_v50 = vsel %vm1523_vm7, %v1516_v6, 920167782 }
 0x186   : > { %v1452_v42 = vclz %v2061_v48  ;;  %v1524_v20 = vsel %vm1520_vm2, %v1504_v51, %v1507_v39  ;;  %v1526_v0 = vsel %vm1522_vm5, %v1510_v21, %v1525_v5  ;;  %v1532_v13 = vsel %vm1520_vm2, %v1510_v21, %v1513_v25 }
 0x187   : > { %v1440_v60 = vadd.s32 %v3513_v19, %v3520_v59  ;;  %v1530_v41 = vsel %vm1522_vm5, %v1513_v25, %v1529_v50  ;;  %v1533_v49 = vsel %vm1523_vm7, %v1519_v27, 1326507024  ;;  %v2068_v18 = vadd.s32 4294967169, %v1596_v4 }
 0x188   : > { %vm1372_vm8 = vweird.f32 %v2579_v53  ;;  %v2062_v2 = vadd.s32 4294967294, %v1452_v42  ;;  %v1471_v7 = vsel %vm1386_vm3, %v1470_v3, %v1446_v44  ;;  %v1531_v16 = vsel %vm1521_vm6, %v1528_v10, %v1530_v41 }
 0x189   : > { %v1534_v47 = vsel %vm1522_vm5, %v1516_v6, %v1533_v49  ;;  %v1527_v36 = vsel %vm1521_vm6, %v1524_v20, %v1526_v0  ;;  %v3585_v38 = vmul.u32.u64.low %v1536_v61, %v1531_v16  ;;  %v3586_v19 = vmul.u32.u64.high %v1536_v61, %v1531_v16, %v3585_v38 }
 0x18a   : > { %v1535_v23 = vsel %vm1521_vm6, %v1532_v13, %v1534_v47  ;;  %vm2063_vm9 = vcmp.lt.s32.totalorder %v2062_v2, 0  ;;  %v1602_v15 = vadd.s32 1, %v2068_v18  ;;  %vm1375_vm12 = vcmp.lt.s32.totalorder %v3540_v31, 2 }
 0x18b   : > { %v3589_v59 = vmul.u32.u64.low %v1536_v61, %v1535_v23  ;;  %v3590_v58 = vmul.u32.u64.high %v1536_v61, %v1535_v23, %v3589_v59  ;;  %vm1379_vm10 = vcmp.eq.s32.totalorder %v3540_v31, 2  ;;  %v1455_v44 = vsel %vm2063_vm9, 0, %v2062_v2 }
 0x18c   : > { %v1473_v62 = vsel %vm3565_vm4, 0, %v1471_v7  ;;  %v1456_v52 = vsub.s32 32, %v1455_v44  ;;  %v1457_v33 = vshll.u32 %v3554_v9, %v1455_v44  ;;  %v1460_v63 = vsub.s32 4294967266, %v1455_v44 }
 0x18d   : > { %vm1603_vm11 = vcmp.gt.s32.totalorder %v1602_v15, 0  ;;  %v1543_v17 = vmul.u32 %v1536_v61, %v1527_v36  ;;  %v1546_v45 = vadd.s32 1, %v3586_v19  ;;  %v1592_v29 = vand.u32 2147483647, %v2583_v55 }
 0x18e   : > { %v2261_v37 = vpop.eup %2260  ;;  %v1604_v8 = vsel %vm1603_vm11, %v1602_v15, 0  ;;  %vm1376_vm13 = vcmp.eq.s32.totalorder %v3540_v31, 0  ;;  %v1458_v35 = vshrl.u32 %v1440_v60, %v1456_v52  ;;  %v1461_v4 = vadd.s32 127, %v1460_v63 }
 0x18f   : > { %v2263_v34 = vpop.eup %2262  ;;  %v1380_v14 = vxor.u32 2147483648, %v2261_v37  ;;  %v1477_v51 = vadd.s32 3, %v1473_v62  ;;  %vm1545_vm15 = vc.u32 %v3590_v58, %v3585_v38  ;;  %v1606_v9 = vand.u32 31, %v1604_v8 }
 0x190   : > { %v1377_v43 = vxor.u32 2147483648, %v2263_v34  ;;  %v1459_v21 = vor.u32 %v1458_v35, %v1457_v33  ;;  %v1462_v22 = vshll.u32 %v1461_v4, 23  ;;  %v1547_v11 = vsel %vm1545_vm15, %v1546_v45, %v3586_v19 }
 0x191   : > { %v1381_v39 = vsel %vm1379_vm10, %v1380_v14, %v2263_v34  ;;  %v1548_v6 = vadd.s32 %v1547_v11, %v1543_v17  ;;  %v1599_v27 = vand.u32 8388607, %v1592_v29  ;;  %v1607_v48 = vsub.s32 32, %v1606_v9 }
 0x192   : > { %v1378_v25 = vsel %vm1376_vm13, %v2261_v37, %v1377_v43  ;;  %v1463_v5 = vor.u32 4788187, %v1462_v22  ;;  %v1466_v10 = vcvt.s32.f32 %v1459_v21  ;;  %v1605_v50 = vshrl.u32 %v1604_v8, 5 }
 0x193   : > { %v1382_v3 = vsel %vm1375_vm12, %v1378_v25, %v1381_v39  ;;  %v1549_v42 = vadd.s32 536870912, %v1548_v6  ;;  %v1609_v20 = vshll.u32 %v2414_v24, %v1606_v9  ;;  %v1612_v0 = vshll.u32 %v2415_v26, %v1606_v9 }
 0x194   : > { %v1383_v61 = vsel %vm1372_vm8, nan, %v1382_v3  ;;  %v1464_v13 = vand.u32 2147483647, %v1463_v5  ;;  %v1610_v60 = vshrl.u32 %v2415_v26, %v1607_v48  ;;  %v1613_v41 = vshrl.u32 %v2416_v28, %v1607_v48 }
 0x195   : > { %v1615_v49 = vshll.u32 %v2416_v28, %v1606_v9  ;;  %1914 = vst [vmem:[%s2885_s3 + $0x50] sm:$0xff] %v1383_v61  ;;  %v1550_v31 = vshrl.u32 %v1549_v42, 30  ;;  %v1616_v18 = vshrl.u32 %v2417_v30, %v1607_v48  ;;  %v1618_v2 = vshll.u32 %v2417_v30, %v1606_v9 }
 0x196   : > { %v1619_v53 = vshrl.u32 %v2418_v32, %v1607_v48  ;;  %v1467_v7 = vmul.f32 %v1466_v10, %v1464_v13  ;;  %v1600_v16 = vor.u32 8388608, %v1599_v27  ;;  %v1621_v47 = vshll.u32 %v2418_v32, %v1606_v9 }
 0x197   : > { %v3621_v36 = vand.u32 3, %v1477_v51  ;;  %v1551_v23 = vshll.u32 %v1550_v31, 30  ;;  %v1608_v19 = vshrl.u32 %v2414_v24, %v1607_v48  ;;  %v1622_v59 = vshrl.u32 %v2419_v40, %v1607_v48 }
 0x198   : > { %v1468_v15 = vxor.u32 2147483648, %v1467_v7  ;;  %v1611_v44 = vor.u32 %v1610_v60, %v1609_v20  ;;  %v1614_v62 = vor.u32 %v1613_v41, %v1612_v0  ;;  %v1620_v52 = vor.u32 %v1619_v53, %v1618_v2 }
 0x199   : > { %v3625_v33 = vsub.s32 %v1548_v6, %v1551_v23  ;;  %v1617_v63 = vor.u32 %v1616_v18, %v1615_v49  ;;  %vm1624_vm14 = vcmp.lt.s32.totalorder %v1605_v50, 1  ;;  %vm1627_vm0 = vcmp.lt.s32.totalorder %v1605_v50, 4 }
 0x19a   : > { %v1469_v37 = vsel %vm1386_vm3, %v1468_v15, %v1467_v7  ;;  %v1623_v17 = vor.u32 %v1622_v59, %v1621_v47  ;;  %vm1626_vm1 = vcmp.lt.s32.totalorder %v1605_v50, 3  ;;  %v1640_v45 = vshll.u32 %v1600_v16, 8 }
 0x19b   : > { %v1472_v8 = vsel %vm3565_vm4, %v2581_v54, %v1469_v37  ;;  %v1554_v34 = vsub.s32 0, %v3625_v33  ;;  %vm1625_vm2 = vcmp.lt.s32.totalorder %v1605_v50, 2  ;;  %v1629_v14 = vsel %vm1627_vm0, %v1617_v63, 2102212464 }
 0x19c   : > { %2264 = vcosq.f32 %v1472_v8  ;;  %v1574_v35 = vsub.s32 4, %v1550_v31  ;;  %v1632_v4 = vsel %vm1624_vm14, %v1611_v44, %v1614_v62  ;;  %v1633_v43 = vsel %vm1627_vm0, %v1620_v52, 920167782 }
 0x19d   : > { %2266 = vsinq.f32 %v1472_v8  ;;  %v2065_v51 = vmin.u32 %v1554_v34, %v3625_v33  ;;  %v1628_v9 = vsel %vm1624_vm14, %v1608_v19, %v1611_v44  ;;  %v1634_v39 = vsel %vm1626_vm1, %v1617_v63, %v1633_v43 }
 0x19e   : > { %v1630_v12 = vsel %vm1626_vm1, %v1614_v62, %v1629_v14  ;;  %v1635_v21 = vsel %vm1625_vm2, %v1632_v4, %v1634_v39  ;;  %v1636_v22 = vsel %vm1624_vm14, %v1614_v62, %v1617_v63  ;;  %v1637_v11 = vsel %vm1627_vm0, %v1623_v17, 1326507024 }
 0x19f   : > { %vm1490_vm3 = vcmp.lt.s32.totalorder %v2565_v46, 0  ;;  %v1556_v25 = vclz %v2065_v51  ;;  %v1638_v27 = vsel %vm1626_vm1, %v1620_v52, %v1637_v11  ;;  %vm1476_vm4 = vweird.f32 %v2581_v54 }
 0x1a0   : > { %v1575_v6 = vsel %vm1490_vm3, %v1574_v35, %v1550_v31  ;;  %v3647_v48 = vmul.u32.u64.low %v1640_v45, %v1635_v21  ;;  %v3648_v3 = vmul.u32.u64.high %v1640_v45, %v1635_v21, %v3647_v48  ;;  %v1631_v10 = vsel %vm1625_vm2, %v1628_v9, %v1630_v12 }
 0x1a1   : > { %v2066_v5 = vadd.s32 4294967294, %v1556_v25  ;;  %v1639_v61 = vsel %vm1625_vm2, %v1636_v22, %v1638_v27  ;;  %v1699_v42 = vand.u32 2139095040, %v2585_v56  ;;  %vm1479_vm5 = vcmp.lt.s32.totalorder %v3621_v36, 2 }
 0x1a2   : > { %vm3658_vm7 = vcmp.le.f32.partialorder %v1488_v1, 0.7853982  ;;  %v3662_v0 = vmul.u32.u64.low %v1640_v45, %v1639_v61  ;;  %v3663_v13 = vmul.u32.u64.high %v1640_v45, %v1639_v61, %v3662_v0  ;;  %v1544_v60 = vadd.s32 %v3585_v38, %v3590_v58 }
 0x1a3   : > { %vm2067_vm6 = vcmp.lt.s32.totalorder %v2066_v5, 0  ;;  %v1696_v50 = vand.u32 2147483647, %v2585_v56  ;;  %v1700_v41 = vshrl.u32 %v1699_v42, 23  ;;  %v1577_v31 = vsel %vm3658_vm7, 0, %v1575_v6 }
 0x1a4   : > { %v1559_v49 = vsel %vm2067_vm6, 0, %v2066_v5  ;;  %v1647_v18 = vmul.u32 %v1640_v45, %v1631_v10  ;;  %v1650_v1 = vadd.s32 1, %v3648_v3  ;;  %vm1480_vm8 = vcmp.eq.s32.totalorder %v3621_v36, 0 }
 0x1a5   : > { %v1560_v2 = vsub.s32 32, %v1559_v49  ;;  %v1561_v53 = vshll.u32 %v3625_v33, %v1559_v49  ;;  %v1564_v7 = vsub.s32 4294967266, %v1559_v49  ;;  %v2072_v16 = vadd.s32 4294967169, %v1700_v41 }
 0x1a6   : > { %v2265_v47 = vpop.eup %2264  ;;  %vm1483_vm9 = vcmp.eq.s32.totalorder %v3621_v36, 2  ;;  %vm1649_vm12 = vc.u32 %v3663_v13, %v3647_v48  ;;  %v1803_v38 = vand.u32 2139095040, %v2587_v57  ;;  %v1581_v62 = vadd.s32 3, %v1577_v31 }
 0x1a7   : > { %v2267_v58 = vpop.eup %2266  ;;  %v1484_v23 = vxor.u32 2147483648, %v2265_v47  ;;  %v1562_v19 = vshrl.u32 %v1544_v60, %v1560_v2  ;;  %v1565_v59 = vadd.s32 127, %v1564_v7  ;;  %v1651_v15 = vsel %vm1649_vm12, %v1650_v1, %v3648_v3 }
 0x1a8   : > { %v1481_v44 = vxor.u32 2147483648, %v2267_v58  ;;  %v1652_v52 = vadd.s32 %v1651_v15, %v1647_v18  ;;  %v1706_v33 = vadd.s32 1, %v2072_v16  ;;  %v1703_v45 = vand.u32 8388607, %v1696_v50 }
 0x1a9   : > { %v1485_v63 = vsel %vm1483_vm9, %v1484_v23, %v2267_v58  ;;  %v1563_v37 = vor.u32 %v1562_v19, %v1561_v53  ;;  %v1566_v17 = vshll.u32 %v1565_v59, 23  ;;  %v1804_v14 = vshrl.u32 %v1803_v38, 23 }
 0x1aa   : > { %v1482_v8 = vsel %vm1480_vm8, %v2265_v47, %v1481_v44  ;;  %v1653_v34 = vadd.s32 536870912, %v1652_v52  ;;  %vm1707_vm10 = vcmp.gt.s32.totalorder %v1706_v33, 0  ;;  %v3688_v22 = vand.u32 3, %v1581_v62 }
 0x1ab   : > { %v1486_v35 = vsel %vm1479_vm5, %v1482_v8, %v1485_v63  ;;  %v1567_v4 = vor.u32 4788187, %v1566_v17  ;;  %v1570_v43 = vcvt.s32.f32 %v1563_v37  ;;  %v1708_v51 = vsel %vm1707_vm10, %v1706_v33, 0 }
 0x1ac   : > { %v1487_v9 = vsel %vm1476_vm4, nan, %v1486_v35  ;;  %v3686_v39 = vshrl.u32 %v1653_v34, 30  ;;  %v1710_v12 = vand.u32 31, %v1708_v51  ;;  %v1800_v6 = vand.u32 2147483647, %v2587_v57 }
 0x1ad   : > { %v1568_v21 = vand.u32 2147483647, %v1567_v4  ;;  %1915 = vst [vmem:[%s2885_s3 + $0x58] sm:$0xff] %v1487_v9  ;;  %v2076_v36 = vadd.s32 4294967169, %v1804_v14  ;;  %v1704_v3 = vor.u32 8388608, %v1703_v45  ;;  %v1709_v5 = vshrl.u32 %v1708_v51, 5 }
 0x1ae   : > { %v1655_v11 = vshll.u32 %v3686_v39, 30  ;;  %v1711_v25 = vsub.s32 32, %v1710_v12  ;;  %v1713_v10 = vshll.u32 %v2414_v24, %v1710_v12  ;;  %v1716_v42 = vshll.u32 %v2415_v26, %v1710_v12 }
 0x1af   : > { %v1571_v27 = vmul.f32 %v1570_v43, %v1568_v21  ;;  %v1719_v0 = vshll.u32 %v2416_v28, %v1710_v12  ;;  %v1722_v31 = vshll.u32 %v2417_v30, %v1710_v12  ;;  %v1648_v18 = vadd.s32 %v3647_v48, %v3663_v13 }
 0x1b0   : > { %v3694_v54 = vsub.s32 %v1652_v52, %v1655_v11  ;;  %v1714_v61 = vshrl.u32 %v2415_v26, %v1711_v25  ;;  %v1717_v41 = vshrl.u32 %v2416_v28, %v1711_v25  ;;  %v1720_v49 = vshrl.u32 %v2417_v30, %v1711_v25 }
 0x1b1   : > { %v1572_v60 = vxor.u32 2147483648, %v1571_v27  ;;  %v1723_v2 = vshrl.u32 %v2418_v32, %v1711_v25  ;;  %v1810_v53 = vadd.s32 1, %v2076_v36  ;;  %v1712_v16 = vshrl.u32 %v2414_v24, %v1711_v25 }
 0x1b2   : > { %v1658_v1 = vsub.s32 0, %v3694_v54  ;;  %v1715_v47 = vor.u32 %v1714_v61, %v1713_v10  ;;  %v1725_v38 = vshll.u32 %v2418_v32, %v1710_v12  ;;  %v1718_v48 = vor.u32 %v1717_v41, %v1716_v42 }
 0x1b3   : > { %v1573_v7 = vsel %vm1490_vm3, %v1572_v60, %v1571_v27  ;;  %v1721_v13 = vor.u32 %v1720_v49, %v1719_v0  ;;  %v1724_v19 = vor.u32 %v1723_v2, %v1722_v31  ;;  %v1726_v59 = vshrl.u32 %v2419_v40, %v1711_v25 }
 0x1b4   : > { %v1576_v58 = vsel %vm3658_vm7, %v2565_v46, %v1573_v7  ;;  %v2069_v23 = vmin.u32 %v1658_v1, %v3694_v54  ;;  %vm1728_vm11 = vcmp.lt.s32.totalorder %v1709_v5, 1  ;;  %vm1594_vm13 = vcmp.lt.s32.totalorder %v2583_v55, 0 }
 0x1b5   : > { %2268 = vcosq.f32 %v1576_v58  ;;  %v1744_v44 = vshll.u32 %v1704_v3, 8  ;;  %vm1811_vm15 = vcmp.gt.s32.totalorder %v1810_v53, 0  ;;  %v1727_v62 = vor.u32 %v1726_v59, %v1725_v38 }
 0x1b6   : > { %2270 = vsinq.f32 %v1576_v58  ;;  %v1660_v15 = vclz %v2069_v23  ;;  %vm1729_vm14 = vcmp.lt.s32.totalorder %v1709_v5, 2  ;;  %vm1730_vm0 = vcmp.lt.s32.totalorder %v1709_v5, 3 }
 0x1b7   : > { %vm1731_vm1 = vcmp.lt.s32.totalorder %v1709_v5, 4  ;;  %v1732_v52 = vsel %vm1728_vm11, %v1712_v16, %v1715_v47  ;;  %v1736_v63 = vsel %vm1728_vm11, %v1715_v47, %v1718_v48  ;;  %vm3720_vm2 = vcmp.le.f32.partialorder %v1592_v29, 0.7853982 }
 0x1b8   : > { %v2070_v20 = vadd.s32 4294967294, %v1660_v15  ;;  %v1733_v33 = vsel %vm1731_vm1, %v1721_v13, 2102212464  ;;  %v1737_v45 = vsel %vm1731_vm1, %v1724_v19, 920167782  ;;  %v1740_v8 = vsel %vm1728_vm11, %v1718_v48, %v1721_v13 }
 0x1b9   : > { %v1734_v17 = vsel %vm1730_vm0, %v1718_v48, %v1733_v33  ;;  %v1741_v34 = vsel %vm1731_vm1, %v1727_v62, 1326507024  ;;  %vm1580_vm3 = vweird.f32 %v2565_v46  ;;  %v1678_v14 = vsub.s32 4, %v3686_v39 }
 0x1ba   : > { %vm2071_vm4 = vcmp.lt.s32.totalorder %v2070_v20, 0  ;;  %v1738_v35 = vsel %vm1730_vm0, %v1721_v13, %v1737_v45  ;;  %v1742_v4 = vsel %vm1730_vm0, %v1724_v19, %v1741_v34  ;;  %v1735_v51 = vsel %vm1729_vm14, %v1732_v52, %v1734_v17 }
 0x1bb   : > { %v1663_v43 = vsel %vm2071_vm4, 0, %v2070_v20  ;;  %v1739_v29 = vsel %vm1729_vm14, %v1736_v63, %v1738_v35  ;;  %v1743_v9 = vsel %vm1729_vm14, %v1740_v8, %v1742_v4  ;;  %v1812_v25 = vsel %vm1811_vm15, %v1810_v53, 0 }
 0x1bc   : > { %v1664_v12 = vsub.s32 32, %v1663_v43  ;;  %v1665_v21 = vshll.u32 %v3694_v54, %v1663_v43  ;;  %v1668_v11 = vsub.s32 4294967266, %v1663_v43  ;;  %vm1583_vm5 = vcmp.lt.s32.totalorder %v3688_v22, 2 }
 0x1bd   : > { %v3732_v36 = vmul.u32.u64.low %v1744_v44, %v1743_v9  ;;  %v3733_v27 = vmul.u32.u64.high %v1744_v44, %v1743_v9, %v3732_v36  ;;  %v3735_v3 = vmul.u32.u64.low %v1744_v44, %v1739_v29  ;;  %v3736_v10 = vmul.u32.u64.high %v1744_v44, %v1739_v29, %v3735_v3 }
 0x1be   : > { %v1666_v61 = vshrl.u32 %v1648_v18, %v1664_v12  ;;  %v1669_v42 = vadd.s32 127, %v1668_v11  ;;  %v1814_v0 = vand.u32 31, %v1812_v25  ;;  %vm1584_vm7 = vcmp.eq.s32.totalorder %v3688_v22, 0 }
 0x1bf   : > { %v2269_v5 = vpop.eup %2268  ;;  %vm1587_vm6 = vcmp.eq.s32.totalorder %v3688_v22, 2  ;;  %v1679_v54 = vsel %vm1594_vm13, %v1678_v14, %v3686_v39  ;;  %v1751_v60 = vmul.u32 %v1744_v44, %v1735_v51  ;;  %vm1753_vm8 = vc.u32 %v3733_v27, %v3735_v3 }
 0x1c0   : > { %v2271_v41 = vpop.eup %2270  ;;  %v1588_v49 = vxor.u32 2147483648, %v2269_v5  ;;  %v1667_v31 = vor.u32 %v1666_v61, %v1665_v21  ;;  %v1670_v1 = vshll.u32 %v1669_v42, 23  ;;  %v1815_v2 = vsub.s32 32, %v1814_v0 }
 0x1c1   : > { %v1585_v53 = vxor.u32 2147483648, %v2271_v41  ;;  %v1754_v18 = vadd.s32 1, %v3736_v10  ;;  %v1807_v7 = vand.u32 8388607, %v1800_v6  ;;  %v1681_v39 = vsel %vm3720_vm2, 0, %v1679_v54 }
 0x1c2   : > { %v1589_v16 = vsel %vm1587_vm6, %v1588_v49, %v2271_v41  ;;  %v1671_v47 = vor.u32 4788187, %v1670_v1  ;;  %v1674_v38 = vcvt.s32.f32 %v1667_v31  ;;  %v1817_v48 = vshll.u32 %v2414_v24, %v1814_v0 }
 0x1c3   : > { %v1586_v58 = vsel %vm1584_vm7, %v2269_v5, %v1585_v53  ;;  %v1755_v23 = vsel %vm1753_vm8, %v1754_v18, %v3736_v10  ;;  %v1818_v13 = vshrl.u32 %v2415_v26, %v1815_v2  ;;  %v1820_v44 = vshll.u32 %v2415_v26, %v1814_v0 }
 0x1c4   : > { %v1590_v19 = vsel %vm1583_vm5, %v1586_v58, %v1589_v16  ;;  %v1672_v59 = vand.u32 2147483647, %v1671_v47  ;;  %v1756_v15 = vadd.s32 %v1755_v23, %v1751_v60  ;;  %v1813_v20 = vshrl.u32 %v1812_v25, 5 }
 0x1c5   : > { %v1591_v62 = vsel %vm1580_vm3, nan, %v1590_v19  ;;  %v1821_v52 = vshrl.u32 %v2416_v28, %v1815_v2  ;;  %v1823_v33 = vshll.u32 %v2416_v28, %v1814_v0  ;;  %v1824_v45 = vshrl.u32 %v2417_v30, %v1815_v2 }
 0x1c6   : > { %v1675_v63 = vmul.f32 %v1674_v38, %v1672_v59  ;;  %v1757_v17 = vadd.s32 536870912, %v1756_v15  ;;  %v1826_v8 = vshll.u32 %v2417_v30, %v1814_v0  ;;  %1916 = vst [vmem:[%s2885_s3 + $0x60] sm:$0xff] %v1591_v62  ;;  %v1827_v22 = vshrl.u32 %v2418_v32, %v1815_v2 }
 0x1c7   : > { %v1829_v34 = vshll.u32 %v2418_v32, %v1814_v0  ;;  %v1830_v26 = vshrl.u32 %v2419_v40, %v1815_v2  ;;  %v1819_v35 = vor.u32 %v1818_v13, %v1817_v48  ;;  %v1822_v4 = vor.u32 %v1821_v52, %v1820_v44 }
 0x1c8   : > { %v1676_v46 = vxor.u32 2147483648, %v1675_v63  ;;  %v3770_v14 = vshrl.u32 %v1757_v17, 30  ;;  %v1685_v43 = vadd.s32 3, %v1681_v39  ;;  %v1808_v28 = vor.u32 8388608, %v1807_v7 }
 0x1c9   : > { %v1828_v51 = vor.u32 %v1827_v22, %v1826_v8  ;;  %vm1832_vm9 = vcmp.lt.s32.totalorder %v1813_v20, 1  ;;  %v1825_v9 = vor.u32 %v1824_v45, %v1823_v33  ;;  %vm1835_vm12 = vcmp.lt.s32.totalorder %v1813_v20, 4 }
 0x1ca   : > { %v1677_v29 = vsel %vm1594_vm13, %v1676_v46, %v1675_v63  ;;  %v1759_v30 = vshll.u32 %v3770_v14, 30  ;;  %v1816_v40 = vshrl.u32 %v2414_v24, %v1815_v2  ;;  %v1831_v12 = vor.u32 %v1830_v26, %v1829_v34 }
 0x1cb   : > { %v1680_v32 = vsel %vm3720_vm2, %v2583_v55, %v1677_v29  ;;  %vm1834_vm10 = vcmp.lt.s32.totalorder %v1813_v20, 3  ;;  %vm1833_vm11 = vcmp.lt.s32.totalorder %v1813_v20, 2  ;;  %v1840_v11 = vsel %vm1832_vm9, %v1819_v35, %v1822_v4 }
 0x1cc   : > { %2272 = vcosq.f32 %v1680_v32  ;;  %v1760_v21 = vsub.s32 %v1756_v15, %v1759_v30  ;;  %v1837_v25 = vsel %vm1835_vm12, %v1825_v9, 2102212464  ;;  %v1841_v36 = vsel %vm1835_vm12, %v1828_v51, 920167782 }
 0x1cd   : > { %2274 = vsinq.f32 %v1680_v32  ;;  %v1848_v10 = vshll.u32 %v1808_v28, 8  ;;  %v1842_v42 = vsel %vm1834_vm10, %v1825_v9, %v1841_v36  ;;  %v1844_v37 = vsel %vm1832_vm9, %v1822_v4, %v1825_v9 }
 0x1ce   : > { %v1762_v61 = vsub.s32 0, %v1760_v21  ;;  %v1843_v24 = vsel %vm1833_vm11, %v1840_v11, %v1842_v42  ;;  %v1845_v0 = vsel %vm1835_vm12, %v1831_v12, 1326507024  ;;  %v1836_v54 = vsel %vm1832_vm9, %v1816_v40, %v1819_v35 }
 0x1cf   : > { %v1838_v60 = vsel %vm1834_vm10, %v1822_v4, %v1837_v25  ;;  %v1846_v41 = vsel %vm1834_vm10, %v1828_v51, %v1845_v0  ;;  %v1686_v49 = vand.u32 3, %v1685_v43  ;;  %v1752_v58 = vadd.s32 %v3735_v3, %v3733_v27 }
 0x1d0   : > { %v2073_v5 = vmin.u32 %v1762_v61, %v1760_v21  ;;  %v1847_v31 = vsel %vm1833_vm11, %v1844_v37, %v1846_v41  ;;  %v3790_v1 = vmul.u32.u64.low %v1848_v10, %v1843_v24  ;;  %v3791_v2 = vmul.u32.u64.high %v1848_v10, %v1843_v24, %v3790_v1 }
 0x1d1   : > { %v1839_v18 = vsel %vm1833_vm11, %v1836_v54, %v1838_v60  ;;  %v3794_v7 = vmul.u32.u64.low %v1848_v10, %v1847_v31  ;;  %v3795_v16 = vmul.u32.u64.high %v1848_v10, %v1847_v31, %v3794_v7  ;;  %vm1687_vm13 = vcmp.lt.s32.totalorder %v1686_v49, 2 }
 0x1d2   : > { %v1764_v53 = vclz %v2073_v5  ;;  %v1858_v38 = vadd.s32 1, %v3791_v2  ;;  %vm1691_vm15 = vcmp.eq.s32.totalorder %v1686_v49, 2  ;;  %v1855_v23 = vmul.u32 %v1848_v10, %v1839_v18 }
 0x1d3   : > { %vm1688_vm0 = vcmp.eq.s32.totalorder %v1686_v49, 0  ;;  %vm1857_vm1 = vc.u32 %v3795_v16, %v3790_v1  ;;  %vm1684_vm2 = vweird.f32 %v2583_v55  ;;  %v1782_v55 = vsub.s32 4, %v3770_v14 }
 0x1d4   : > { %v2074_v47 = vadd.s32 4294967294, %v1764_v53  ;;  %v1859_v52 = vsel %vm1857_vm1, %v1858_v38, %v3791_v2  ;;  %vm1698_vm3 = vcmp.lt.s32.totalorder %v2585_v56, 0  ;;  %vm1697_vm4 = vcmp.le.f32.partialorder %v1696_v50, 0.7853982 }
 0x1d5   : > { %v1860_v63 = vadd.s32 %v1859_v52, %v1855_v23  ;;  %v1783_v30 = vsel %vm1698_vm3, %v1782_v55, %v3770_v14  ;;  %v1856_v10 = vadd.s32 %v3790_v1, %v3795_v16  ;;  %vm1788_vm9 = vweird.f32 %v2585_v56 }
 0x1d6   : > { %v2273_v39 = vpop.eup %2272  ;;  %vm2075_vm14 = vcmp.lt.s32.totalorder %v2074_v47, 0  ;;  %vm1802_vm12 = vcmp.lt.s32.totalorder %v2587_v57, 0  ;;  %vm1801_vm10 = vcmp.le.f32.partialorder %v1800_v6, 0.7853982 }
 0x1d7   : > { %v2275_v48 = vpop.eup %2274  ;;  %v1692_v13 = vxor.u32 2147483648, %v2273_v39  ;;  %v1767_v19 = vsel %vm2075_vm14, 0, %v2074_v47  ;;  %v1861_v34 = vadd.s32 536870912, %v1860_v63  ;;  %vm1892_vm14 = vweird.f32 %v2587_v57 }
 0x1d8   : > { %v1689_v59 = vxor.u32 2147483648, %v2275_v48  ;;  %v1768_v15 = vsub.s32 32, %v1767_v19  ;;  %v1769_v44 = vshll.u32 %v1760_v21, %v1767_v19  ;;  %v1772_v62 = vsub.s32 4294967266, %v1767_v19 }
 0x1d9   : > { %v1693_v20 = vsel %vm1691_vm15, %v1692_v13, %v2275_v48  ;;  %v1862_v35 = vshrl.u32 %v1861_v34, 30  ;;  %v1785_v21 = vsel %vm1697_vm4, 0, %v1783_v30 }
 0x1da   : > { %v1690_v33 = vsel %vm1688_vm0, %v2273_v39, %v1689_v59  ;;  %v1770_v27 = vshrl.u32 %v1752_v58, %v1768_v15  ;;  %v1773_v3 = vadd.s32 127, %v1772_v62  ;;  %v1789_v25 = vadd.s32 3, %v1785_v21 }
 0x1db   : > { %v1694_v17 = vsel %vm1687_vm13, %v1690_v33, %v1693_v20  ;;  %v1863_v43 = vshll.u32 %v1862_v35, 30  ;;  %v1886_v16 = vsub.s32 4, %v1862_v35 }
 0x1dc   : > { %v1695_v45 = vsel %vm1684_vm2, nan, %v1694_v17  ;;  %v1771_v8 = vor.u32 %v1770_v27, %v1769_v44  ;;  %v1774_v22 = vshll.u32 %v1773_v3, 23  ;;  %v1790_v42 = vand.u32 3, %v1789_v25 }
 0x1dd   : > { %1917 = vst [vmem:[%s2885_s3 + $0x68] sm:$0xff] %v1695_v45  ;;  %v1864_v51 = vsub.s32 %v1860_v63, %v1863_v43  ;;  %v1887_v23 = vsel %vm1802_vm12, %v1886_v16, %v1862_v35 }
 0x1de   : > { %v1775_v26 = vor.u32 4788187, %v1774_v22  ;;  %v1778_v46 = vcvt.s32.f32 %v1771_v8  ;;  %vm1795_vm7 = vcmp.eq.s32.totalorder %v1790_v42, 2  ;;  %vm1792_vm6 = vcmp.eq.s32.totalorder %v1790_v42, 0 }
 0x1df   : > { %v1866_v9 = vsub.s32 0, %v1864_v51  ;;  %vm1791_vm8 = vcmp.lt.s32.totalorder %v1790_v42, 2  ;;  %v1889_v13 = vsel %vm1801_vm10, 0, %v1887_v23 }
 0x1e0   : > { %v1776_v4 = vand.u32 2147483647, %v1775_v26  ;;  %v1893_v19 = vadd.s32 3, %v1889_v13 }
 0x1e1   : > { %v2077_v40 = vmin.u32 %v1866_v9, %v1864_v51 }
 0x1e2   : > { %v1779_v28 = vmul.f32 %v1778_v46, %v1776_v4  ;;  %v1894_v59 = vand.u32 3, %v1893_v19 }
 0x1e3   : > { %v1868_v11 = vclz %v2077_v40 }
 0x1e4   : > { %v1780_v29 = vxor.u32 2147483648, %v1779_v28  ;;  %vm1899_vm11 = vcmp.eq.s32.totalorder %v1894_v59, 2  ;;  %vm1896_vm13 = vcmp.eq.s32.totalorder %v1894_v59, 0  ;;  %vm1895_vm15 = vcmp.lt.s32.totalorder %v1894_v59, 2 }
 0x1e5   : > { %v2078_v36 = vadd.s32 4294967294, %v1868_v11 }
 0x1e6   : > { %v1781_v32 = vsel %vm1698_vm3, %v1780_v29, %v1779_v28 }
 0x1e7   : > { %v1784_v12 = vsel %vm1697_vm4, %v2585_v56, %v1781_v32  ;;  %vm2079_vm5 = vcmp.lt.s32.totalorder %v2078_v36, 0 }
 0x1e8   : > { %2276 = vcosq.f32 %v1784_v12  ;;  %v1871_v61 = vsel %vm2079_vm5, 0, %v2078_v36 }
 0x1e9   : > { %2278 = vsinq.f32 %v1784_v12  ;;  %v1872_v50 = vsub.s32 32, %v1871_v61  ;;  %v1873_v37 = vshll.u32 %v1864_v51, %v1871_v61  ;;  %v1876_v24 = vsub.s32 4294967266, %v1871_v61 }
 0x1eb   : > { %v1874_v14 = vshrl.u32 %v1856_v10, %v1872_v50  ;;  %v1877_v0 = vadd.s32 127, %v1876_v24 }
 0x1ed   : > { %v1875_v54 = vor.u32 %v1874_v14, %v1873_v37  ;;  %v1878_v60 = vshll.u32 %v1877_v0, 23 }
 0x1ef   : > { %v1879_v2 = vor.u32 4788187, %v1878_v60  ;;  %v1882_v1 = vcvt.s32.f32 %v1875_v54 }
 0x1f1   : > { %v1880_v7 = vand.u32 2147483647, %v1879_v2 }
 0x1f2   : > { %v2277_v5 = vpop.eup %2276 }
 0x1f3   : > { %v2279_v41 = vpop.eup %2278  ;;  %v1796_v49 = vxor.u32 2147483648, %v2277_v5  ;;  %v1883_v39 = vmul.f32 %v1882_v1, %v1880_v7 }
 0x1f4   : > { %v1793_v31 = vxor.u32 2147483648, %v2279_v41 }
 0x1f5   : > { %v1797_v53 = vsel %vm1795_vm7, %v1796_v49, %v2279_v41  ;;  %v1884_v58 = vxor.u32 2147483648, %v1883_v39 }
 0x1f6   : > { %v1794_v18 = vsel %vm1792_vm6, %v2277_v5, %v1793_v31 }
 0x1f7   : > { %v1798_v47 = vsel %vm1791_vm8, %v1794_v18, %v1797_v53  ;;  %v1885_v48 = vsel %vm1802_vm12, %v1884_v58, %v1883_v39 }
 0x1f8   : > { %v1799_v38 = vsel %vm1788_vm9, nan, %v1798_v47  ;;  %v1888_v56 = vsel %vm1801_vm10, %v2587_v57, %v1885_v48 }
 0x1f9   : > { %1918 = vst [vmem:[%s2885_s3 + $0x70] sm:$0xff] %v1799_v38  ;;  %2280 = vcosq.f32 %v1888_v56 }
 0x1fa   : > { %2282 = vsinq.f32 %v1888_v56 }
 0x203   : > { %v2281_v15 = vpop.eup %2280 }
 0x204   : > { %v2283_v44 = vpop.eup %2282  ;;  %v1900_v62 = vxor.u32 2147483648, %v2281_v15 }
 0x205   : > { %v1897_v6 = vxor.u32 2147483648, %v2283_v44 }
 0x206   : > { %v1901_v20 = vsel %vm1899_vm11, %v1900_v62, %v2283_v44 }
 0x207   : > { %v1898_v52 = vsel %vm1896_vm13, %v2281_v15, %v1897_v6 }
 0x208   : > { %v1902_v33 = vsel %vm1895_vm15, %v1898_v52, %v1901_v20 }
 0x209   : > { %v1903_v27 = vsel %vm1892_vm14, nan, %v1902_v33 }
 0x20a   : > { %1919 = vst [vmem:[%s2885_s3 + $0x78] sm:$0xff] %v1903_v27 }
 0x20b   : > { %2353 = shalt.err (!%p2350_p8)
}
 0x20c   : > { %s2354_s24 = scalar_lea.hbm %s3824_s8, 2048  ;;  %s2358_s23 = scalar_lea.hbm %s3874_s2, 4096 }
 0x20d   : > { %p2355_p11 = scmp.ne.s32.totalorder %s3824_s8, %s2354_s24  ;;  %p2359_p0 = scmp.lt.u32.totalorder %s3824_s8, %s3874_s2 }
 0x20e   : > { %p2360_p5 = scmp.lt.u32.totalorder %s2358_s23, %s2354_s24  ;;  %p2362_p12 = scmp.lt.u32.totalorder %s2354_s24, %s3824_s8 }
 0x20f   : > { %p2356_p13 = pnand %p2355_p11, %p3915_p10 }
 0x210   : > { %p2361_p9 = por %p2360_p5, %p2359_p0 }
 0x211   : > { %p2357_p6 = pneg %p2356_p13 }
 0x212   : > { %p2363_p1 = por %p2362_p12, %p2361_p9 }
 0x214   : > { %p2364_p2 = pnand %p2363_p1, %p2357_p6 }
 0x216   : > { %2367 = shalt.err (!%p2364_p2)
}
 0x217   : > { %s2421_s26 = smov 512   ;;  %s2422_s21 = smov 32  }
 0x218   : > { %2160 = dma.vmem_to_hbm [thread:$0]  (%p3915_p10), %s3826_s5, 2048, %s3824_s8, %s3831_s13, %s2421_s26, %s2421_s26, %s2422_s21  }
 0x219 PF: > { %p2177_p3 = scmp.ge.s32.totalorder %s2410_s12, 2  ;;  %s1950_s25 = sand.u32 1, %s2398_s9  }
 0x21a   : > { %p3916_p4 = scmp.ne.s32.totalorder %s3879_s20, 0  ;;  %s1951_s3 = scalar_lea.sflag [#allocation4], %s1950_s25 }
 0x21c   : > { %p2170_p7 = pnand %p2177_p3, %p3916_p4 }
 0x21e   : > { %2393 = dma.done.wait (!%p2170_p7), %s1951_s3, 2048  }
 0x21f   : > { %2395 = vsyncadd (!%p2170_p7), %s1951_s3, 4294965248  ;;  %p14_p8 = scmp.ge.s32.totalorder %s2463_s15, 4   ;;  %s3917_s9 = smov %s2402_s10 }
 0x220   : > { %s3918_s10 = smov %s2406_s11  ;;  %s3919_s11 = smov %s2474_s18 }
 0x221   : > { %s3920_s12 = smov %s2463_s15  ;;  %16 = sbr.rel (!%p14_p8) target bundleno = 5 (0x5), region = 69 }
 0x228   :  { %1956 = vsyncpa [#allocation3], 1 }
 0x229   :  { %1958 = vsyncpa [#allocation3 + $0x1], 1 }
 0x22a   :  { %1959 = vsyncpa [#allocation6], 1 }
 0x22b   :  { %1960 = vsyncpa [#allocation4], 1 }
 0x22c   :  { %1962 = vsyncpa [#allocation4 + $0x1], 1 }

</bundles_post_ra>
